<compile_context>
chip_gen: v7x
topology: tpu7x:2x2x1
jax: 0.10.0
libtpu: 0.0.40
codegen_flags: <defaults>
</compile_context>

<pallas_src>
import functools

import jax
import jax.numpy as jnp
from jax.experimental import pallas as pl
from jax.experimental.pallas import tpu as pltpu


# ----------------------------------------------------------------------------
# Generic fused linear:  y = act(x @ W + b)
# ----------------------------------------------------------------------------
def _linear_kernel(x_ref, w_ref, b_ref, o_ref, *, activation):
    y = jnp.dot(x_ref[...], w_ref[...], preferred_element_type=jnp.float32)
    y = y + b_ref[...]
    if activation == "tanh":
        y = jnp.tanh(y)
    elif activation == "sigmoid":
        y = jax.nn.sigmoid(y)
    o_ref[...] = y


def linear(x, w, b, activation=None, n_block=512):
    """x:[M,K] w:[K,N] b:[1,N] -> [M,N].

    When N is large and a multiple of `n_block`, the lane (N) axis is tiled
    with a 'parallel' grid so the weight streams through VMEM in lane-dense
    blocks (needed for realistic vocab sizes / v7x's 64 MiB VMEM). At toy
    sizes it falls back to a single full-block call.
    """
    M, K = x.shape
    N = w.shape[1]
    kern = functools.partial(_linear_kernel, activation=activation)
    if n_block is None or N <= n_block or N % n_block != 0:
        return pl.pallas_call(
            kern, out_shape=jax.ShapeDtypeStruct((M, N), jnp.float32),
        )(x, w, b)
    return pl.pallas_call(
        kern,
        out_shape=jax.ShapeDtypeStruct((M, N), jnp.float32),
        grid=(N // n_block,),
        in_specs=[
            pl.BlockSpec((M, K), lambda j: (0, 0)),
            pl.BlockSpec((K, n_block), lambda j: (0, j)),
            pl.BlockSpec((1, n_block), lambda j: (0, j)),
        ],
        out_specs=pl.BlockSpec((M, n_block), lambda j: (0, j)),
        compiler_params=pltpu.CompilerParams(dimension_semantics=("parallel",)),
    )(x, w, b)


# ----------------------------------------------------------------------------
# Selective gate (fused single matmul):  out = x * sigmoid([x | s_n] @ [W1;W2] + b)
# ----------------------------------------------------------------------------
def _sel_gate_kernel(xc_ref, w_ref, b_ref, o_ref, *, hid):
    xc = xc_ref[...]                                       # [M, 2H] = [x | s_n]
    g = jnp.dot(xc, w_ref[...], preferred_element_type=jnp.float32) + b_ref[...]
    o_ref[...] = xc[:, :hid] * jax.nn.sigmoid(g)


def selective_gate(xc, w_cat, b_sum, hid):
    M = xc.shape[0]
    return pl.pallas_call(
        functools.partial(_sel_gate_kernel, hid=hid),
        out_shape=jax.ShapeDtypeStruct((M, hid), jnp.float32),
    )(xc, w_cat, b_sum)


# ----------------------------------------------------------------------------
# Fused bidirectional encoder GRU recurrence (one pallas_call, grid=(S,))
# Input projections gi = embeds @ W_ih + b_ih are precomputed (hoisted).
# ----------------------------------------------------------------------------
def _gru_step(gi, h, wh_ref, bh_ref, hid):
    """PyTorch GRU cell semantics (gate order r, z, n); gi already has b_ih."""
    gh = jnp.dot(h, wh_ref[...], preferred_element_type=jnp.float32) + bh_ref[...]
    r = jax.nn.sigmoid(gi[:, 0 * hid:1 * hid] + gh[:, 0 * hid:1 * hid])
    z = jax.nn.sigmoid(gi[:, 1 * hid:2 * hid] + gh[:, 1 * hid:2 * hid])
    n = jnp.tanh(gi[:, 2 * hid:3 * hid] + r * gh[:, 2 * hid:3 * hid])
    return (1.0 - z) * n + z * h


def _bigru_kernel(gif_ref, gib_ref, whf_ref, whb_ref, bhf_ref, bhb_ref,
                  sf_ref, sb_ref, hf_sc, hb_sc, *, hid):
    t = pl.program_id(0)

    @pl.when(t == 0)
    def _():
        hf_sc[...] = jnp.zeros_like(hf_sc)
        hb_sc[...] = jnp.zeros_like(hb_sc)

    h_f = _gru_step(gif_ref[0], hf_sc[...], whf_ref, bhf_ref, hid)
    h_b = _gru_step(gib_ref[0], hb_sc[...], whb_ref, bhb_ref, hid)
    hf_sc[...] = h_f
    hb_sc[...] = h_b
    sf_ref[0] = h_f
    sb_ref[0] = h_b


def bigru_encoder(gi_f, gi_b, wh_f, wh_b, bh_f, bh_b):
    """gi_f/gi_b: [S, B, 3*hh] time-major precomputed input projections."""
    S, B, _ = gi_f.shape
    hh = wh_f.shape[0]
    return pl.pallas_call(
        functools.partial(_bigru_kernel, hid=hh),
        out_shape=(jax.ShapeDtypeStruct((S, B, hh), jnp.float32),
                   jax.ShapeDtypeStruct((S, B, hh), jnp.float32)),
        grid=(S,),
        in_specs=[
            pl.BlockSpec((1, B, 3 * hh), lambda t: (t, 0, 0)),
            pl.BlockSpec((1, B, 3 * hh), lambda t: (S - 1 - t, 0, 0)),
            pl.BlockSpec((hh, 3 * hh), lambda t: (0, 0)),   # weights resident
            pl.BlockSpec((hh, 3 * hh), lambda t: (0, 0)),
            pl.BlockSpec((1, 3 * hh), lambda t: (0, 0)),
            pl.BlockSpec((1, 3 * hh), lambda t: (0, 0)),
        ],
        out_specs=(
            pl.BlockSpec((1, B, hh), lambda t: (t, 0, 0)),
            pl.BlockSpec((1, B, hh), lambda t: (S - 1 - t, 0, 0)),
        ),
        scratch_shapes=[pltpu.VMEM((B, hh), jnp.float32),
                        pltpu.VMEM((B, hh), jnp.float32)],
        # recurrence -> must run sequentially on one core
        compiler_params=pltpu.CompilerParams(dimension_semantics=("arbitrary",)),
    )(gi_f, gi_b, wh_f, wh_b, bh_f, bh_b)


# ----------------------------------------------------------------------------
# Fused decoder loop: dot attention + GRU step, one pallas_call, grid=(T-1,)
# ----------------------------------------------------------------------------
def _decoder_kernel(gie_ref, enc_ref, hb_ref, wini_ref, bini_ref,
                    wic_ref, wh_ref, bh_ref, hid_out_ref, h_sc, *, hid):
    i = pl.program_id(0)

    # step 0: hidden = tanh(init_decoder_hidden(enc_hidden_bwd))
    @pl.when(i == 0)
    def _():
        h_sc[...] = jnp.tanh(
            jnp.dot(hb_ref[...], wini_ref[...],
                    preferred_element_type=jnp.float32) + bini_ref[...])

    h = h_sc[...]                                    # [B, H]
    enc = enc_ref[...]                               # [B, S, H]  (VMEM-resident)

    # --- dot attention over the whole batch (no per-batch grid loop) ---
    # Single-query matvec shape -> VPU broadcast-multiply + reduce; softmax
    # denominator goes through the (otherwise idle) EUP via pl.reciprocal.
    s = jnp.sum(h[:, None, :] * enc, axis=-1)        # [B, S] lane-dense scores
    s = s - jnp.max(s, axis=-1, keepdims=True)
    e = jnp.exp(s)
    alpha = e * pl.reciprocal(jnp.sum(e, axis=-1, keepdims=True), approx=True)
    c_t = jnp.sum(alpha[:, :, None] * enc, axis=1)   # [B, H]

    # --- GRU step; embedding part of gi (+ b_ih) was precomputed/hoisted ---
    gi = gie_ref[0] + jnp.dot(c_t, wic_ref[...], preferred_element_type=jnp.float32)
    gh = jnp.dot(h, wh_ref[...], preferred_element_type=jnp.float32) + bh_ref[...]
    r = jax.nn.sigmoid(gi[:, 0 * hid:1 * hid] + gh[:, 0 * hid:1 * hid])
    z = jax.nn.sigmoid(gi[:, 1 * hid:2 * hid] + gh[:, 1 * hid:2 * hid])
    n = jnp.tanh(gi[:, 2 * hid:3 * hid] + r * gh[:, 2 * hid:3 * hid])
    h_new = (1.0 - z) * n + z * h

    h_sc[...] = h_new
    hid_out_ref[0] = h_new


def decoder_loop(gie_tm, enc_states, hb, w_init, b_init, wi_c, wh, bh):
    Tm1, B, _ = gie_tm.shape
    _, S, H = enc_states.shape
    hh = hb.shape[1]
    return pl.pallas_call(
        functools.partial(_decoder_kernel, hid=H),
        out_shape=jax.ShapeDtypeStruct((Tm1, B, H), jnp.float32),
        grid=(Tm1,),
        in_specs=[
            pl.BlockSpec((1, B, 3 * H), lambda i: (i, 0, 0)),   # precomputed gi(emb)
            pl.BlockSpec((B, S, H), lambda i: (0, 0, 0)),       # enc_states resident
            pl.BlockSpec((B, hh), lambda i: (0, 0)),
            pl.BlockSpec((hh, H), lambda i: (0, 0)),
            pl.BlockSpec((1, H), lambda i: (0, 0)),
            pl.BlockSpec((H, 3 * H), lambda i: (0, 0)),
            pl.BlockSpec((H, 3 * H), lambda i: (0, 0)),
            pl.BlockSpec((1, 3 * H), lambda i: (0, 0)),
        ],
        out_specs=pl.BlockSpec((1, B, H), lambda i: (i, 0, 0)),
        scratch_shapes=[pltpu.VMEM((B, H), jnp.float32)],
        compiler_params=pltpu.CompilerParams(dimension_semantics=("arbitrary",)),
    )(gie_tm, enc_states, hb, w_init, b_init, wi_c, wh, bh)


# ----------------------------------------------------------------------------
# Parameters (deterministic synthetic init)
# ----------------------------------------------------------------------------
def _uinit(key, shape, fan_in):
    s = 1.0 / jnp.sqrt(jnp.float32(fan_in))
    return jax.random.uniform(key, shape, jnp.float32, -s, s)


def init_params(key, vocab_size, emb_dim, hid_dim):
    hh = hid_dim // 2
    keys = iter(jax.random.split(key, 32))
    p = {}
    p["emb"] = jax.random.normal(next(keys), (vocab_size, emb_dim), jnp.float32) * 0.1
    for d in ("fwd", "bwd"):
        p[f"enc_wi_{d}"] = _uinit(next(keys), (emb_dim, 3 * hh), hh)
        p[f"enc_wh_{d}"] = _uinit(next(keys), (hh, 3 * hh), hh)
        p[f"enc_bi_{d}"] = _uinit(next(keys), (1, 3 * hh), hh)
        p[f"enc_bh_{d}"] = _uinit(next(keys), (1, 3 * hh), hh)
    p["w1"] = _uinit(next(keys), (hid_dim, hid_dim), hid_dim)
    p["b1"] = _uinit(next(keys), (1, hid_dim), hid_dim)
    p["w2"] = _uinit(next(keys), (hid_dim, hid_dim), hid_dim)
    p["b2"] = _uinit(next(keys), (1, hid_dim), hid_dim)
    p["w_init"] = _uinit(next(keys), (hh, hid_dim), hh)
    p["b_init"] = _uinit(next(keys), (1, hid_dim), hh)
    p["dec_wi"] = _uinit(next(keys), (emb_dim + hid_dim, 3 * hid_dim), hid_dim)
    p["dec_wh"] = _uinit(next(keys), (hid_dim, 3 * hid_dim), hid_dim)
    p["dec_bi"] = _uinit(next(keys), (1, 3 * hid_dim), hid_dim)
    p["dec_bh"] = _uinit(next(keys), (1, 3 * hid_dim), hid_dim)
    p["w_vocab"] = _uinit(next(keys), (hid_dim, vocab_size), hid_dim)
    p["b_vocab"] = _uinit(next(keys), (1, vocab_size), hid_dim)
    return p


# ----------------------------------------------------------------------------
# Model forward (encode + teacher-forced decode)
# ----------------------------------------------------------------------------
def encode(params, src, hid_dim):
    B, S = src.shape
    hh = hid_dim // 2
    emb_dim = params["emb"].shape[1]

    embeds_tm = jnp.take(params["emb"], src, axis=0).transpose(1, 0, 2)  # [S,B,E]

    # Hoisted input projection for BOTH directions: one [S*B, E] @ [E, 6hh].
    wi_cat = jnp.concatenate([params["enc_wi_fwd"], params["enc_wi_bwd"]], axis=1)
    bi_cat = jnp.concatenate([params["enc_bi_fwd"], params["enc_bi_bwd"]], axis=1)
    gi_all = linear(embeds_tm.reshape(S * B, emb_dim), wi_cat, bi_cat)
    gi_all = gi_all.reshape(S, B, 6 * hh)
    gi_f, gi_b = gi_all[:, :, :3 * hh], gi_all[:, :, 3 * hh:]

    # Fused bidirectional recurrence (single pallas_call).
    states_f, states_b = bigru_encoder(
        gi_f, gi_b,
        params["enc_wh_fwd"], params["enc_wh_bwd"],
        params["enc_bh_fwd"], params["enc_bh_bwd"])            # [S,B,hh] each

    h_f_last = states_f[S - 1]                                 # enc_hidden[0]
    h_b_last = states_b[0]                                     # enc_hidden[1]
    s_n = jnp.concatenate([h_f_last, h_b_last], axis=-1)       # [B, H]

    # Selective gate as one fused matmul on [x | s_n].
    states_tm = jnp.concatenate([states_f, states_b], axis=-1)           # [S,B,H]
    x_flat = states_tm.reshape(S * B, hid_dim)
    sn_flat = jnp.broadcast_to(s_n[None], (S, B, hid_dim)).reshape(S * B, hid_dim)
    xc = jnp.concatenate([x_flat, sn_flat], axis=-1)                     # [S*B,2H]
    w_cat = jnp.concatenate([params["w1"], params["w2"]], axis=0)        # [2H, H]
    b_sum = params["b1"] + params["b2"]
    gated = selective_gate(xc, w_cat, b_sum, hid_dim)                    # [S*B, H]

    enc_states = gated.reshape(S, B, hid_dim).transpose(1, 0, 2)         # [B,S,H]
    return enc_states, h_b_last


def decode(params, enc_states, h_b_last, trg, vocab_size, emb_dim, hid_dim):
    B, S, H = enc_states.shape
    T = trg.shape[1]
    Tm1 = T - 1

    # Hoisted decoder input projection: embeds @ W_ih[:E] + b_ih for all steps.
    wi_e = params["dec_wi"][:emb_dim]            # [E, 3H]
    wi_c = params["dec_wi"][emb_dim:]            # [H, 3H]
    trg_emb_tm = jnp.take(params["emb"], trg[:, :Tm1], axis=0).transpose(1, 0, 2)
    gie = linear(trg_emb_tm.reshape(Tm1 * B, emb_dim), wi_e, params["dec_bi"])
    gie_tm = gie.reshape(Tm1, B, 3 * H)

    # Fused attention + GRU recurrence (single pallas_call).
    hiddens = decoder_loop(
        gie_tm, enc_states, h_b_last,
        params["w_init"], params["b_init"],
        wi_c, params["dec_wh"], params["dec_bh"])              # [T-1, B, H]

    # Vocab projection hoisted out of the loop: one lane-dense matmul.
    logits_flat = linear(hiddens.reshape(Tm1 * B, H),
                         params["w_vocab"], params["b_vocab"])  # [(T-1)*B, V]
    return logits_flat.reshape(Tm1, B, vocab_size).transpose(1, 0, 2)  # [B,T-1,V]


@functools.partial(jax.jit, static_argnames=("vocab_size", "emb_dim", "hid_dim"))
def seq2seq_attention_forward(params, src, trg, *, vocab_size, emb_dim, hid_dim):
    enc_states, h_b_last = encode(params, src, hid_dim)
    return decode(params, enc_states, h_b_last, trg, vocab_size, emb_dim, hid_dim)


# TODO(synk): beam-search / test-mode decoding (data-dependent control flow) is
# not implemented; only the teacher-forced training path of forward() is covered.

# ----------------------------------------------------------------------------
if __name__ == "__main__":
    VOCAB = 50
    EMB = 16
    HID = 32          # hid_dim // 2 = 16 per encoder direction
    BATCH = 2
    SRC_LEN = 8
    TRG_LEN = 6       # produces [BATCH, 5, VOCAB] logits

    key = jax.random.PRNGKey(0)
    k_params, k_src, k_trg = jax.random.split(key, 3)

    params = init_params(k_params, VOCAB, EMB, HID)
    src = jax.random.randint(k_src, (BATCH, SRC_LEN), 0, VOCAB, dtype=jnp.int32)
    trg = jax.random.randint(k_trg, (BATCH, TRG_LEN), 0, VOCAB, dtype=jnp.int32)

    logits = seq2seq_attention_forward(
        params, src, trg, vocab_size=VOCAB, emb_dim=EMB, hid_dim=HID)
    logits = jax.block_until_ready(logits)

    assert logits.shape == (BATCH, TRG_LEN - 1, VOCAB), logits.shape
    assert logits.dtype == jnp.float32
    print("KERNEL_OK")
</pallas_src>

<mosaic_0001>
module attributes {stable_mosaic.version = 11 : i64} {
  func.func @_linear_kernel(%arg0: memref<10x16xf32, #tpu.memory_space<vmem>>, %arg1: memref<16x96xf32, #tpu.memory_space<vmem>>, %arg2: memref<1x96xf32, #tpu.memory_space<vmem>>, %arg3: memref<10x96xf32, #tpu.memory_space<vmem>>) attributes {dimension_semantics = [], scalar_prefetch = 0 : i64, scratch_operands = 0 : i64, tpu.core_type = #tpu.core_type<tc>} {
    %c0 = arith.constant 0 : index
    %c0_0 = arith.constant 0 : index
    %0 = vector.load %arg0[%c0, %c0_0] : memref<10x16xf32, #tpu.memory_space<vmem>>, vector<10x16xf32>
    %c0_1 = arith.constant 0 : index
    %c0_2 = arith.constant 0 : index
    %1 = vector.load %arg1[%c0_1, %c0_2] : memref<16x96xf32, #tpu.memory_space<vmem>>, vector<16x96xf32>
    %cst = arith.constant dense<0.000000e+00> : vector<10x96xf32>
    %2 = tpu.matmul %0, %1, %cst {dimension_numbers = #tpu.dot_dimension_numbers<[1], [0], [0], [1], [0, 0, 1, 1], [], []>} : vector<10x16xf32>, vector<16x96xf32>, vector<10x96xf32> -> vector<10x96xf32>
    %c0_3 = arith.constant 0 : index
    %c0_4 = arith.constant 0 : index
    %3 = vector.load %arg2[%c0_3, %c0_4] : memref<1x96xf32, #tpu.memory_space<vmem>>, vector<1x96xf32>
    %4 = vector.broadcast %3 : vector<1x96xf32> to vector<10x96xf32>
    %5 = arith.addf %2, %4 : vector<10x96xf32>
    %c0_5 = arith.constant 0 : index
    %c0_6 = arith.constant 0 : index
    %6 = vector.load %arg3[%c0_5, %c0_6] : memref<10x96xf32, #tpu.memory_space<vmem>>, vector<10x96xf32>
    tpu.vector_store %arg3[%c0_5, %c0_6], %5 {strides = array<i32>} : memref<10x96xf32, #tpu.memory_space<vmem>>, vector<10x96xf32>,
    return
  }
}

module attributes {stable_mosaic.version = 11 : i64} {
  func.func @_linear_kernel(%arg0: memref<16x16xf32, #tpu.memory_space<vmem>>, %arg1: memref<16x96xf32, #tpu.memory_space<vmem>>, %arg2: memref<1x96xf32, #tpu.memory_space<vmem>>, %arg3: memref<16x96xf32, #tpu.memory_space<vmem>>) attributes {dimension_semantics = [], scalar_prefetch = 0 : i64, scratch_operands = 0 : i64, tpu.core_type = #tpu.core_type<tc>} {
    %c0 = arith.constant 0 : index
    %c0_0 = arith.constant 0 : index
    %0 = vector.load %arg0[%c0, %c0_0] : memref<16x16xf32, #tpu.memory_space<vmem>>, vector<16x16xf32>
    %c0_1 = arith.constant 0 : index
    %c0_2 = arith.constant 0 : index
    %1 = vector.load %arg1[%c0_1, %c0_2] : memref<16x96xf32, #tpu.memory_space<vmem>>, vector<16x96xf32>
    %cst = arith.constant dense<0.000000e+00> : vector<16x96xf32>
    %2 = tpu.matmul %0, %1, %cst {dimension_numbers = #tpu.dot_dimension_numbers<[1], [0], [0], [1], [0, 0, 1, 1], [], []>} : vector<16x16xf32>, vector<16x96xf32>, vector<16x96xf32> -> vector<16x96xf32>
    %c0_3 = arith.constant 0 : index
    %c0_4 = arith.constant 0 : index
    %3 = vector.load %arg2[%c0_3, %c0_4] : memref<1x96xf32, #tpu.memory_space<vmem>>, vector<1x96xf32>
    %4 = vector.broadcast %3 : vector<1x96xf32> to vector<16x96xf32>
    %5 = arith.addf %2, %4 : vector<16x96xf32>
    %c0_5 = arith.constant 0 : index
    %c0_6 = arith.constant 0 : index
    %6 = vector.load %arg3[%c0_5, %c0_6] : memref<16x96xf32, #tpu.memory_space<vmem>>, vector<16x96xf32>
    tpu.vector_store %arg3[%c0_5, %c0_6], %5 {strides = array<i32>} : memref<16x96xf32, #tpu.memory_space<vmem>>, vector<16x96xf32>,
    return
  }
}

module attributes {stable_mosaic.version = 11 : i64} {
  func.func @_bigru_kernel(%arg0: i32, %arg1: memref<1x2x48xf32, #tpu.memory_space<vmem>>, %arg2: memref<1x2x48xf32, #tpu.memory_space<vmem>>, %arg3: memref<16x48xf32, #tpu.memory_space<vmem>>, %arg4: memref<16x48xf32, #tpu.memory_space<vmem>>, %arg5: memref<1x48xf32, #tpu.memory_space<vmem>>, %arg6: memref<1x48xf32, #tpu.memory_space<vmem>>, %arg7: memref<1x2x16xf32, #tpu.memory_space<vmem>>, %arg8: memref<1x2x16xf32, #tpu.memory_space<vmem>>, %arg9: memref<2x16xf32, #tpu.memory_space<vmem>>, %arg10: memref<2x16xf32, #tpu.memory_space<vmem>>) attributes {dimension_semantics = [#tpu.dimension_semantics<arbitrary>], iteration_bounds = array<i64: 8>, scalar_prefetch = 0 : i64, scratch_operands = 2 : i64, tpu.core_type = #tpu.core_type<tc>, window_params = [{transform_indices = @transform_0, window_bounds = array<i64: 1, 2, 48>}, {transform_indices = @transform_1, window_bounds = array<i64: 1, 2, 48>}, {pipeline_mode = #tpu.pipeline_mode<synchronous>, transform_indices = @transform_2, window_bounds = array<i64: 16, 48>}, {pipeline_mode = #tpu.pipeline_mode<synchronous>, transform_indices = @transform_3, window_bounds = array<i64: 16, 48>}, {pipeline_mode = #tpu.pipeline_mode<synchronous>, transform_indices = @transform_4, window_bounds = array<i64: 1, 48>}, {pipeline_mode = #tpu.pipeline_mode<synchronous>, transform_indices = @transform_5, window_bounds = array<i64: 1, 48>}, {transform_indices = @transform_6, window_bounds = array<i64: 1, 2, 16>}, {transform_indices = @transform_7, window_bounds = array<i64: 1, 2, 16>}]} {
    %c0_i32 = arith.constant 0 : i32
    %0 = arith.cmpi eq, %arg0, %c0_i32 : i32
    %1 = arith.extui %0 : i1 to i32
    %c0_i32_0 = arith.constant 0 : i32
    %2 = arith.cmpi ne, %1, %c0_i32_0 : i32
    scf.if %2 {
      %cst_35 = arith.constant 0.000000e+00 : f32
      %79 = vector.broadcast %cst_35 : f32 to vector<2x16xf32>
      %c0_36 = arith.constant 0 : index
      %c0_37 = arith.constant 0 : index
      %80 = vector.load %arg9[%c0_36, %c0_37] : memref<2x16xf32, #tpu.memory_space<vmem>>, vector<2x16xf32>
      tpu.vector_store %arg9[%c0_36, %c0_37], %79 {strides = array<i32>} : memref<2x16xf32, #tpu.memory_space<vmem>>, vector<2x16xf32>,
      %cst_38 = arith.constant 0.000000e+00 : f32
      %81 = vector.broadcast %cst_38 : f32 to vector<2x16xf32>
      %c0_39 = arith.constant 0 : index
      %c0_40 = arith.constant 0 : index
      %82 = vector.load %arg10[%c0_39, %c0_40] : memref<2x16xf32, #tpu.memory_space<vmem>>, vector<2x16xf32>
      tpu.vector_store %arg10[%c0_39, %c0_40], %81 {strides = array<i32>} : memref<2x16xf32, #tpu.memory_space<vmem>>, vector<2x16xf32>,
    } else {
    }
    %c0 = arith.constant 0 : index
    %c0_1 = arith.constant 0 : index
    %c0_2 = arith.constant 0 : index
    %3 = vector.load %arg1[%c0, %c0_1, %c0_2] : memref<1x2x48xf32, #tpu.memory_space<vmem>>, vector<1x2x48xf32>
    %4 = vector.shape_cast %3 : vector<1x2x48xf32> to vector<2x48xf32>
    %c0_3 = arith.constant 0 : index
    %c0_4 = arith.constant 0 : index
    %5 = vector.load %arg9[%c0_3, %c0_4] : memref<2x16xf32, #tpu.memory_space<vmem>>, vector<2x16xf32>
    %c0_5 = arith.constant 0 : index
    %c0_6 = arith.constant 0 : index
    %6 = vector.load %arg3[%c0_5, %c0_6] : memref<16x48xf32, #tpu.memory_space<vmem>>, vector<16x48xf32>
    %cst = arith.constant dense<0.000000e+00> : vector<2x48xf32>
    %7 = tpu.matmul %5, %6, %cst {dimension_numbers = #tpu.dot_dimension_numbers<[1], [0], [0], [1], [0, 0, 1, 1], [], []>} : vector<2x16xf32>, vector<16x48xf32>, vector<2x48xf32> -> vector<2x48xf32>
    %c0_7 = arith.constant 0 : index
    %c0_8 = arith.constant 0 : index
    %8 = vector.load %arg5[%c0_7, %c0_8] : memref<1x48xf32, #tpu.memory_space<vmem>>, vector<1x48xf32>
    %9 = vector.broadcast %8 : vector<1x48xf32> to vector<2x48xf32>
    %10 = arith.addf %7, %9 : vector<2x48xf32>
    %11 = vector.extract_strided_slice %4 {offsets = [0, 0], sizes = [2, 16], strides = [1, 1]} : vector<2x48xf32> to vector<2x16xf32>
    %12 = vector.extract_strided_slice %10 {offsets = [0, 0], sizes = [2, 16], strides = [1, 1]} : vector<2x48xf32> to vector<2x16xf32>
    %13 = arith.addf %11, %12 : vector<2x16xf32>
    %14 = arith.negf %13 : vector<2x16xf32>
    %15 = math.exp %14 : vector<2x16xf32>
    %cst_9 = arith.constant 1.000000e+00 : f32
    %16 = vector.broadcast %cst_9 : f32 to vector<2x16xf32>
    %17 = arith.addf %16, %15 : vector<2x16xf32>
    %18 = arith.divf %16, %17 : vector<2x16xf32>
    %19 = vector.extract_strided_slice %4 {offsets = [0, 16], sizes = [2, 16], strides = [1, 1]} : vector<2x48xf32> to vector<2x16xf32>
    %20 = vector.extract_strided_slice %10 {offsets = [0, 16], sizes = [2, 16], strides = [1, 1]} : vector<2x48xf32> to vector<2x16xf32>
    %21 = arith.addf %19, %20 : vector<2x16xf32>
    %22 = arith.negf %21 : vector<2x16xf32>
    %23 = math.exp %22 : vector<2x16xf32>
    %cst_10 = arith.constant 1.000000e+00 : f32
    %24 = vector.broadcast %cst_10 : f32 to vector<2x16xf32>
    %25 = arith.addf %24, %23 : vector<2x16xf32>
    %26 = arith.divf %24, %25 : vector<2x16xf32>
    %27 = vector.extract_strided_slice %4 {offsets = [0, 32], sizes = [2, 16], strides = [1, 1]} : vector<2x48xf32> to vector<2x16xf32>
    %28 = vector.extract_strided_slice %10 {offsets = [0, 32], sizes = [2, 16], strides = [1, 1]} : vector<2x48xf32> to vector<2x16xf32>
    %29 = arith.mulf %18, %28 : vector<2x16xf32>
    %30 = arith.addf %27, %29 : vector<2x16xf32>
    %31 = math.tanh %30 : vector<2x16xf32>
    %cst_11 = arith.constant 1.000000e+00 : f32
    %32 = vector.broadcast %cst_11 : f32 to vector<2x16xf32>
    %33 = arith.subf %32, %26 : vector<2x16xf32>
    %34 = arith.mulf %33, %31 : vector<2x16xf32>
    %35 = arith.mulf %26, %5 : vector<2x16xf32>
    %36 = arith.addf %34, %35 : vector<2x16xf32>
    %c0_12 = arith.constant 0 : index
    %c0_13 = arith.constant 0 : index
    %c0_14 = arith.constant 0 : index
    %37 = vector.load %arg2[%c0_12, %c0_13, %c0_14] : memref<1x2x48xf32, #tpu.memory_space<vmem>>, vector<1x2x48xf32>
    %38 = vector.shape_cast %37 : vector<1x2x48xf32> to vector<2x48xf32>
    %c0_15 = arith.constant 0 : index
    %c0_16 = arith.constant 0 : index
    %39 = vector.load %arg10[%c0_15, %c0_16] : memref<2x16xf32, #tpu.memory_space<vmem>>, vector<2x16xf32>
    %c0_17 = arith.constant 0 : index
    %c0_18 = arith.constant 0 : index
    %40 = vector.load %arg4[%c0_17, %c0_18] : memref<16x48xf32, #tpu.memory_space<vmem>>, vector<16x48xf32>
    %cst_19 = arith.constant dense<0.000000e+00> : vector<2x48xf32>
    %41 = tpu.matmul %39, %40, %cst_19 {dimension_numbers = #tpu.dot_dimension_numbers<[1], [0], [0], [1], [0, 0, 1, 1], [], []>} : vector<2x16xf32>, vector<16x48xf32>, vector<2x48xf32> -> vector<2x48xf32>
    %c0_20 = arith.constant 0 : index
    %c0_21 = arith.constant 0 : index
    %42 = vector.load %arg6[%c0_20, %c0_21] : memref<1x48xf32, #tpu.memory_space<vmem>>, vector<1x48xf32>
    %43 = vector.broadcast %42 : vector<1x48xf32> to vector<2x48xf32>
    %44 = arith.addf %41, %43 : vector<2x48xf32>
    %45 = vector.extract_strided_slice %38 {offsets = [0, 0], sizes = [2, 16], strides = [1, 1]} : vector<2x48xf32> to vector<2x16xf32>
    %46 = vector.extract_strided_slice %44 {offsets = [0, 0], sizes = [2, 16], strides = [1, 1]} : vector<2x48xf32> to vector<2x16xf32>
    %47 = arith.addf %45, %46 : vector<2x16xf32>
    %48 = arith.negf %47 : vector<2x16xf32>
    %49 = math.exp %48 : vector<2x16xf32>
    %cst_22 = arith.constant 1.000000e+00 : f32
    %50 = vector.broadcast %cst_22 : f32 to vector<2x16xf32>
    %51 = arith.addf %50, %49 : vector<2x16xf32>
    %52 = arith.divf %50, %51 : vector<2x16xf32>
    %53 = vector.extract_strided_slice %38 {offsets = [0, 16], sizes = [2, 16], strides = [1, 1]} : vector<2x48xf32> to vector<2x16xf32>
    %54 = vector.extract_strided_slice %44 {offsets = [0, 16], sizes = [2, 16], strides = [1, 1]} : vector<2x48xf32> to vector<2x16xf32>
    %55 = arith.addf %53, %54 : vector<2x16xf32>
    %56 = arith.negf %55 : vector<2x16xf32>
    %57 = math.exp %56 : vector<2x16xf32>
    %cst_23 = arith.constant 1.000000e+00 : f32
    %58 = vector.broadcast %cst_23 : f32 to vector<2x16xf32>
    %59 = arith.addf %58, %57 : vector<2x16xf32>
    %60 = arith.divf %58, %59 : vector<2x16xf32>
    %61 = vector.extract_strided_slice %38 {offsets = [0, 32], sizes = [2, 16], strides = [1, 1]} : vector<2x48xf32> to vector<2x16xf32>
    %62 = vector.extract_strided_slice %44 {offsets = [0, 32], sizes = [2, 16], strides = [1, 1]} : vector<2x48xf32> to vector<2x16xf32>
    %63 = arith.mulf %52, %62 : vector<2x16xf32>
    %64 = arith.addf %61, %63 : vector<2x16xf32>
    %65 = math.tanh %64 : vector<2x16xf32>
    %cst_24 = arith.constant 1.000000e+00 : f32
    %66 = vector.broadcast %cst_24 : f32 to vector<2x16xf32>
    %67 = arith.subf %66, %60 : vector<2x16xf32>
    %68 = arith.mulf %67, %65 : vector<2x16xf32>
    %69 = arith.mulf %60, %39 : vector<2x16xf32>
    %70 = arith.addf %68, %69 : vector<2x16xf32>
    %c0_25 = arith.constant 0 : index
    %c0_26 = arith.constant 0 : index
    %71 = vector.load %arg9[%c0_25, %c0_26] : memref<2x16xf32, #tpu.memory_space<vmem>>, vector<2x16xf32>
    tpu.vector_store %arg9[%c0_25, %c0_26], %36 {strides = array<i32>} : memref<2x16xf32, #tpu.memory_space<vmem>>, vector<2x16xf32>,
    %c0_27 = arith.constant 0 : index
    %c0_28 = arith.constant 0 : index
    %72 = vector.load %arg10[%c0_27, %c0_28] : memref<2x16xf32, #tpu.memory_space<vmem>>, vector<2x16xf32>
    tpu.vector_store %arg10[%c0_27, %c0_28], %70 {strides = array<i32>} : memref<2x16xf32, #tpu.memory_space<vmem>>, vector<2x16xf32>,
    %c0_29 = arith.constant 0 : index
    %c0_30 = arith.constant 0 : index
    %c0_31 = arith.constant 0 : index
    %73 = vector.load %arg7[%c0_29, %c0_30, %c0_31] : memref<1x2x16xf32, #tpu.memory_space<vmem>>, vector<1x2x16xf32>
    %74 = vector.shape_cast %73 : vector<1x2x16xf32> to vector<2x16xf32>
    %75 = vector.shape_cast %36 : vector<2x16xf32> to vector<1x2x16xf32>
    tpu.vector_store %arg7[%c0_29, %c0_30, %c0_31], %75 {strides = array<i32>} : memref<1x2x16xf32, #tpu.memory_space<vmem>>, vector<1x2x16xf32>,
    %c0_32 = arith.constant 0 : index
    %c0_33 = arith.constant 0 : index
    %c0_34 = arith.constant 0 : index
    %76 = vector.load %arg8[%c0_32, %c0_33, %c0_34] : memref<1x2x16xf32, #tpu.memory_space<vmem>>, vector<1x2x16xf32>
    %77 = vector.shape_cast %76 : vector<1x2x16xf32> to vector<2x16xf32>
    %78 = vector.shape_cast %70 : vector<2x16xf32> to vector<1x2x16xf32>
    tpu.vector_store %arg8[%c0_32, %c0_33, %c0_34], %78 {strides = array<i32>} : memref<1x2x16xf32, #tpu.memory_space<vmem>>, vector<1x2x16xf32>,
    return
  }
  func.func @transform_0(%arg0: i32) -> (i32, i32, i32) {
    %c0_i32 = arith.constant 0 : i32
    %c0_i32_0 = arith.constant 0 : i32
    %c0_i32_1 = arith.constant 0 : i32
    return %arg0, %c0_i32, %c0_i32_0 : i32, i32, i32
  }
  func.func @transform_1(%arg0: i32) -> (i32, i32, i32) {
    %c7_i32 = arith.constant 7 : i32
    %0 = arith.subi %c7_i32, %arg0 : i32
    %c0_i32 = arith.constant 0 : i32
    %c0_i32_0 = arith.constant 0 : i32
    %c0_i32_1 = arith.constant 0 : i32
    return %0, %c0_i32, %c0_i32_0 : i32, i32, i32
  }
  func.func @transform_2(%arg0: i32) -> (i32, i32) {
    %c0_i32 = arith.constant 0 : i32
    %c0_i32_0 = arith.constant 0 : i32
    %c0_i32_1 = arith.constant 0 : i32
    return %c0_i32, %c0_i32_0 : i32, i32
  }
  func.func @transform_3(%arg0: i32) -> (i32, i32) {
    %c0_i32 = arith.constant 0 : i32
    %c0_i32_0 = arith.constant 0 : i32
    %c0_i32_1 = arith.constant 0 : i32
    return %c0_i32, %c0_i32_0 : i32, i32
  }
  func.func @transform_4(%arg0: i32) -> (i32, i32) {
    %c0_i32 = arith.constant 0 : i32
    %c0_i32_0 = arith.constant 0 : i32
    %c0_i32_1 = arith.constant 0 : i32
    return %c0_i32, %c0_i32_0 : i32, i32
  }
  func.func @transform_5(%arg0: i32) -> (i32, i32) {
    %c0_i32 = arith.constant 0 : i32
    %c0_i32_0 = arith.constant 0 : i32
    %c0_i32_1 = arith.constant 0 : i32
    return %c0_i32, %c0_i32_0 : i32, i32
  }
  func.func @transform_6(%arg0: i32) -> (i32, i32, i32) {
    %c0_i32 = arith.constant 0 : i32
    %c0_i32_0 = arith.constant 0 : i32
    %c0_i32_1 = arith.constant 0 : i32
    return %arg0, %c0_i32, %c0_i32_0 : i32, i32, i32
  }
  func.func @transform_7(%arg0: i32) -> (i32, i32, i32) {
    %c7_i32 = arith.constant 7 : i32
    %0 = arith.subi %c7_i32, %arg0 : i32
    %c0_i32 = arith.constant 0 : i32
    %c0_i32_0 = arith.constant 0 : i32
    %c0_i32_1 = arith.constant 0 : i32
    return %0, %c0_i32, %c0_i32_0 : i32, i32, i32
  }
}

module attributes {stable_mosaic.version = 11 : i64} {
  func.func @_sel_gate_kernel(%arg0: memref<16x64xf32, #tpu.memory_space<vmem>>, %arg1: memref<64x32xf32, #tpu.memory_space<vmem>>, %arg2: memref<1x32xf32, #tpu.memory_space<vmem>>, %arg3: memref<16x32xf32, #tpu.memory_space<vmem>>) attributes {dimension_semantics = [], scalar_prefetch = 0 : i64, scratch_operands = 0 : i64, tpu.core_type = #tpu.core_type<tc>} {
    %c0 = arith.constant 0 : index
    %c0_0 = arith.constant 0 : index
    %0 = vector.load %arg0[%c0, %c0_0] : memref<16x64xf32, #tpu.memory_space<vmem>>, vector<16x64xf32>
    %c0_1 = arith.constant 0 : index
    %c0_2 = arith.constant 0 : index
    %1 = vector.load %arg1[%c0_1, %c0_2] : memref<64x32xf32, #tpu.memory_space<vmem>>, vector<64x32xf32>
    %cst = arith.constant dense<0.000000e+00> : vector<16x32xf32>
    %2 = tpu.matmul %0, %1, %cst {dimension_numbers = #tpu.dot_dimension_numbers<[1], [0], [0], [1], [0, 0, 1, 1], [], []>} : vector<16x64xf32>, vector<64x32xf32>, vector<16x32xf32> -> vector<16x32xf32>
    %c0_3 = arith.constant 0 : index
    %c0_4 = arith.constant 0 : index
    %3 = vector.load %arg2[%c0_3, %c0_4] : memref<1x32xf32, #tpu.memory_space<vmem>>, vector<1x32xf32>
    %4 = vector.broadcast %3 : vector<1x32xf32> to vector<16x32xf32>
    %5 = arith.addf %2, %4 : vector<16x32xf32>
    %6 = vector.extract_strided_slice %0 {offsets = [0, 0], sizes = [16, 32], strides = [1, 1]} : vector<16x64xf32> to vector<16x32xf32>
    %7 = arith.negf %5 : vector<16x32xf32>
    %8 = math.exp %7 : vector<16x32xf32>
    %cst_5 = arith.constant 1.000000e+00 : f32
    %9 = vector.broadcast %cst_5 : f32 to vector<16x32xf32>
    %10 = arith.addf %9, %8 : vector<16x32xf32>
    %11 = arith.divf %9, %10 : vector<16x32xf32>
    %12 = arith.mulf %6, %11 : vector<16x32xf32>
    %c0_6 = arith.constant 0 : index
    %c0_7 = arith.constant 0 : index
    %13 = vector.load %arg3[%c0_6, %c0_7] : memref<16x32xf32, #tpu.memory_space<vmem>>, vector<16x32xf32>
    tpu.vector_store %arg3[%c0_6, %c0_7], %12 {strides = array<i32>} : memref<16x32xf32, #tpu.memory_space<vmem>>, vector<16x32xf32>,
    return
  }
}

module attributes {stable_mosaic.version = 11 : i64} {
  func.func @_linear_kernel(%arg0: memref<10x32xf32, #tpu.memory_space<vmem>>, %arg1: memref<32x50xf32, #tpu.memory_space<vmem>>, %arg2: memref<1x50xf32, #tpu.memory_space<vmem>>, %arg3: memref<10x50xf32, #tpu.memory_space<vmem>>) attributes {dimension_semantics = [], scalar_prefetch = 0 : i64, scratch_operands = 0 : i64, tpu.core_type = #tpu.core_type<tc>} {
    %c0 = arith.constant 0 : index
    %c0_0 = arith.constant 0 : index
    %0 = vector.load %arg0[%c0, %c0_0] : memref<10x32xf32, #tpu.memory_space<vmem>>, vector<10x32xf32>
    %c0_1 = arith.constant 0 : index
    %c0_2 = arith.constant 0 : index
    %1 = vector.load %arg1[%c0_1, %c0_2] : memref<32x50xf32, #tpu.memory_space<vmem>>, vector<32x50xf32>
    %cst = arith.constant dense<0.000000e+00> : vector<10x50xf32>
    %2 = tpu.matmul %0, %1, %cst {dimension_numbers = #tpu.dot_dimension_numbers<[1], [0], [0], [1], [0, 0, 1, 1], [], []>} : vector<10x32xf32>, vector<32x50xf32>, vector<10x50xf32> -> vector<10x50xf32>
    %c0_3 = arith.constant 0 : index
    %c0_4 = arith.constant 0 : index
    %3 = vector.load %arg2[%c0_3, %c0_4] : memref<1x50xf32, #tpu.memory_space<vmem>>, vector<1x50xf32>
    %4 = vector.broadcast %3 : vector<1x50xf32> to vector<10x50xf32>
    %5 = arith.addf %2, %4 : vector<10x50xf32>
    %c0_5 = arith.constant 0 : index
    %c0_6 = arith.constant 0 : index
    %6 = vector.load %arg3[%c0_5, %c0_6] : memref<10x50xf32, #tpu.memory_space<vmem>>, vector<10x50xf32>
    tpu.vector_store %arg3[%c0_5, %c0_6], %5 {strides = array<i32>} : memref<10x50xf32, #tpu.memory_space<vmem>>, vector<10x50xf32>,
    return
  }
}

module attributes {stable_mosaic.version = 11 : i64} {
  func.func @_decoder_kernel(%arg0: i32, %arg1: memref<1x2x96xf32, #tpu.memory_space<vmem>>, %arg2: memref<2x8x32xf32, #tpu.memory_space<vmem>>, %arg3: memref<2x16xf32, #tpu.memory_space<vmem>>, %arg4: memref<16x32xf32, #tpu.memory_space<vmem>>, %arg5: memref<1x32xf32, #tpu.memory_space<vmem>>, %arg6: memref<32x96xf32, #tpu.memory_space<vmem>>, %arg7: memref<32x96xf32, #tpu.memory_space<vmem>>, %arg8: memref<1x96xf32, #tpu.memory_space<vmem>>, %arg9: memref<1x2x32xf32, #tpu.memory_space<vmem>>, %arg10: memref<2x32xf32, #tpu.memory_space<vmem>>) attributes {dimension_semantics = [#tpu.dimension_semantics<arbitrary>], iteration_bounds = array<i64: 5>, scalar_prefetch = 0 : i64, scratch_operands = 1 : i64, tpu.core_type = #tpu.core_type<tc>, window_params = [{transform_indices = @transform_0, window_bounds = array<i64: 1, 2, 96>}, {pipeline_mode = #tpu.pipeline_mode<synchronous>, transform_indices = @transform_1, window_bounds = array<i64: 2, 8, 32>}, {pipeline_mode = #tpu.pipeline_mode<synchronous>, transform_indices = @transform_2, window_bounds = array<i64: 2, 16>}, {pipeline_mode = #tpu.pipeline_mode<synchronous>, transform_indices = @transform_3, window_bounds = array<i64: 16, 32>}, {pipeline_mode = #tpu.pipeline_mode<synchronous>, transform_indices = @transform_4, window_bounds = array<i64: 1, 32>}, {pipeline_mode = #tpu.pipeline_mode<synchronous>, transform_indices = @transform_5, window_bounds = array<i64: 32, 96>}, {pipeline_mode = #tpu.pipeline_mode<synchronous>, transform_indices = @transform_6, window_bounds = array<i64: 32, 96>}, {pipeline_mode = #tpu.pipeline_mode<synchronous>, transform_indices = @transform_7, window_bounds = array<i64: 1, 96>}, {transform_indices = @transform_8, window_bounds = array<i64: 1, 2, 32>}]} {
    %c0_i32 = arith.constant 0 : i32
    %0 = arith.cmpi eq, %arg0, %c0_i32 : i32
    %1 = arith.extui %0 : i1 to i32
    %c0_i32_0 = arith.constant 0 : i32
    %2 = arith.cmpi ne, %1, %c0_i32_0 : i32
    scf.if %2 {
      %c0_27 = arith.constant 0 : index
      %c0_28 = arith.constant 0 : index
      %63 = vector.load %arg3[%c0_27, %c0_28] : memref<2x16xf32, #tpu.memory_space<vmem>>, vector<2x16xf32>
      %c0_29 = arith.constant 0 : index
      %c0_30 = arith.constant 0 : index
      %64 = vector.load %arg4[%c0_29, %c0_30] : memref<16x32xf32, #tpu.memory_space<vmem>>, vector<16x32xf32>
      %cst_31 = arith.constant dense<0.000000e+00> : vector<2x32xf32>
      %65 = tpu.matmul %63, %64, %cst_31 {dimension_numbers = #tpu.dot_dimension_numbers<[1], [0], [0], [1], [0, 0, 1, 1], [], []>} : vector<2x16xf32>, vector<16x32xf32>, vector<2x32xf32> -> vector<2x32xf32>
      %c0_32 = arith.constant 0 : index
      %c0_33 = arith.constant 0 : index
      %66 = vector.load %arg5[%c0_32, %c0_33] : memref<1x32xf32, #tpu.memory_space<vmem>>, vector<1x32xf32>
      %67 = vector.broadcast %66 : vector<1x32xf32> to vector<2x32xf32>
      %68 = arith.addf %65, %67 : vector<2x32xf32>
      %69 = math.tanh %68 : vector<2x32xf32>
      %c0_34 = arith.constant 0 : index
      %c0_35 = arith.constant 0 : index
      %70 = vector.load %arg10[%c0_34, %c0_35] : memref<2x32xf32, #tpu.memory_space<vmem>>, vector<2x32xf32>
      tpu.vector_store %arg10[%c0_34, %c0_35], %69 {strides = array<i32>} : memref<2x32xf32, #tpu.memory_space<vmem>>, vector<2x32xf32>,
    } else {
    }
    %c0 = arith.constant 0 : index
    %c0_1 = arith.constant 0 : index
    %3 = vector.load %arg10[%c0, %c0_1] : memref<2x32xf32, #tpu.memory_space<vmem>>, vector<2x32xf32>
    %c0_2 = arith.constant 0 : index
    %c0_3 = arith.constant 0 : index
    %c0_4 = arith.constant 0 : index
    %4 = vector.load %arg2[%c0_2, %c0_3, %c0_4] : memref<2x8x32xf32, #tpu.memory_space<vmem>>, vector<2x8x32xf32>
    %5 = vector.shape_cast %3 : vector<2x32xf32> to vector<2x1x32xf32>
    %6 = vector.broadcast %5 : vector<2x1x32xf32> to vector<2x8x32xf32>
    %7 = arith.mulf %6, %4 : vector<2x8x32xf32>
    %cst = arith.constant dense<0.000000e+00> : vector<2x8xf32>
    %8 = vector.multi_reduction <add>, %7, %cst [2] : vector<2x8x32xf32> to vector<2x8xf32>
    %cst_5 = arith.constant dense<0xFF800000> : vector<2xf32>
    %9 = vector.multi_reduction <maximumf>, %8, %cst_5 [1] : vector<2x8xf32> to vector<2xf32>
    %10 = vector.shape_cast %9 : vector<2xf32> to vector<2x1xf32>
    %11 = vector.broadcast %10 : vector<2x1xf32> to vector<2x8xf32>
    %12 = arith.subf %8, %11 : vector<2x8xf32>
    %13 = math.exp %12 : vector<2x8xf32>
    %cst_6 = arith.constant dense<0.000000e+00> : vector<2xf32>
    %14 = vector.multi_reduction <add>, %13, %cst_6 [1] : vector<2x8xf32> to vector<2xf32>
    %15 = vector.shape_cast %14 : vector<2xf32> to vector<2x1xf32>
    %16 = tpu.reciprocal %15 {approx = true} : vector<2x1xf32> -> vector<2x1xf32>
    %17 = vector.broadcast %16 : vector<2x1xf32> to vector<2x8xf32>
    %18 = arith.mulf %13, %17 : vector<2x8xf32>
    %19 = vector.shape_cast %18 : vector<2x8xf32> to vector<2x8x1xf32>
    %20 = vector.broadcast %19 : vector<2x8x1xf32> to vector<2x8x32xf32>
    %21 = arith.mulf %20, %4 : vector<2x8x32xf32>
    %cst_7 = arith.constant dense<0.000000e+00> : vector<2x32xf32>
    %22 = vector.multi_reduction <add>, %21, %cst_7 [1] : vector<2x8x32xf32> to vector<2x32xf32>
    %c0_8 = arith.constant 0 : index
    %c0_9 = arith.constant 0 : index
    %c0_10 = arith.constant 0 : index
    %23 = vector.load %arg1[%c0_8, %c0_9, %c0_10] : memref<1x2x96xf32, #tpu.memory_space<vmem>>, vector<1x2x96xf32>
    %24 = vector.shape_cast %23 : vector<1x2x96xf32> to vector<2x96xf32>
    %c0_11 = arith.constant 0 : index
    %c0_12 = arith.constant 0 : index
    %25 = vector.load %arg6[%c0_11, %c0_12] : memref<32x96xf32, #tpu.memory_space<vmem>>, vector<32x96xf32>
    %cst_13 = arith.constant dense<0.000000e+00> : vector<2x96xf32>
    %26 = tpu.matmul %22, %25, %cst_13 {dimension_numbers = #tpu.dot_dimension_numbers<[1], [0], [0], [1], [0, 0, 1, 1], [], []>} : vector<2x32xf32>, vector<32x96xf32>, vector<2x96xf32> -> vector<2x96xf32>
    %27 = arith.addf %24, %26 : vector<2x96xf32>
    %c0_14 = arith.constant 0 : index
    %c0_15 = arith.constant 0 : index
    %28 = vector.load %arg7[%c0_14, %c0_15] : memref<32x96xf32, #tpu.memory_space<vmem>>, vector<32x96xf32>
    %cst_16 = arith.constant dense<0.000000e+00> : vector<2x96xf32>
    %29 = tpu.matmul %3, %28, %cst_16 {dimension_numbers = #tpu.dot_dimension_numbers<[1], [0], [0], [1], [0, 0, 1, 1], [], []>} : vector<2x32xf32>, vector<32x96xf32>, vector<2x96xf32> -> vector<2x96xf32>
    %c0_17 = arith.constant 0 : index
    %c0_18 = arith.constant 0 : index
    %30 = vector.load %arg8[%c0_17, %c0_18] : memref<1x96xf32, #tpu.memory_space<vmem>>, vector<1x96xf32>
    %31 = vector.broadcast %30 : vector<1x96xf32> to vector<2x96xf32>
    %32 = arith.addf %29, %31 : vector<2x96xf32>
    %33 = vector.extract_strided_slice %27 {offsets = [0, 0], sizes = [2, 32], strides = [1, 1]} : vector<2x96xf32> to vector<2x32xf32>
    %34 = vector.extract_strided_slice %32 {offsets = [0, 0], sizes = [2, 32], strides = [1, 1]} : vector<2x96xf32> to vector<2x32xf32>
    %35 = arith.addf %33, %34 : vector<2x32xf32>
    %36 = arith.negf %35 : vector<2x32xf32>
    %37 = math.exp %36 : vector<2x32xf32>
    %cst_19 = arith.constant 1.000000e+00 : f32
    %38 = vector.broadcast %cst_19 : f32 to vector<2x32xf32>
    %39 = arith.addf %38, %37 : vector<2x32xf32>
    %40 = arith.divf %38, %39 : vector<2x32xf32>
    %41 = vector.extract_strided_slice %27 {offsets = [0, 32], sizes = [2, 32], strides = [1, 1]} : vector<2x96xf32> to vector<2x32xf32>
    %42 = vector.extract_strided_slice %32 {offsets = [0, 32], sizes = [2, 32], strides = [1, 1]} : vector<2x96xf32> to vector<2x32xf32>
    %43 = arith.addf %41, %42 : vector<2x32xf32>
    %44 = arith.negf %43 : vector<2x32xf32>
    %45 = math.exp %44 : vector<2x32xf32>
    %cst_20 = arith.constant 1.000000e+00 : f32
    %46 = vector.broadcast %cst_20 : f32 to vector<2x32xf32>
    %47 = arith.addf %46, %45 : vector<2x32xf32>
    %48 = arith.divf %46, %47 : vector<2x32xf32>
    %49 = vector.extract_strided_slice %27 {offsets = [0, 64], sizes = [2, 32], strides = [1, 1]} : vector<2x96xf32> to vector<2x32xf32>
    %50 = vector.extract_strided_slice %32 {offsets = [0, 64], sizes = [2, 32], strides = [1, 1]} : vector<2x96xf32> to vector<2x32xf32>
    %51 = arith.mulf %40, %50 : vector<2x32xf32>
    %52 = arith.addf %49, %51 : vector<2x32xf32>
    %53 = math.tanh %52 : vector<2x32xf32>
    %cst_21 = arith.constant 1.000000e+00 : f32
    %54 = vector.broadcast %cst_21 : f32 to vector<2x32xf32>
    %55 = arith.subf %54, %48 : vector<2x32xf32>
    %56 = arith.mulf %55, %53 : vector<2x32xf32>
    %57 = arith.mulf %48, %3 : vector<2x32xf32>
    %58 = arith.addf %56, %57 : vector<2x32xf32>
    %c0_22 = arith.constant 0 : index
    %c0_23 = arith.constant 0 : index
    %59 = vector.load %arg10[%c0_22, %c0_23] : memref<2x32xf32, #tpu.memory_space<vmem>>, vector<2x32xf32>
    tpu.vector_store %arg10[%c0_22, %c0_23], %58 {strides = array<i32>} : memref<2x32xf32, #tpu.memory_space<vmem>>, vector<2x32xf32>,
    %c0_24 = arith.constant 0 : index
    %c0_25 = arith.constant 0 : index
    %c0_26 = arith.constant 0 : index
    %60 = vector.load %arg9[%c0_24, %c0_25, %c0_26] : memref<1x2x32xf32, #tpu.memory_space<vmem>>, vector<1x2x32xf32>
    %61 = vector.shape_cast %60 : vector<1x2x32xf32> to vector<2x32xf32>
    %62 = vector.shape_cast %58 : vector<2x32xf32> to vector<1x2x32xf32>
    tpu.vector_store %arg9[%c0_24, %c0_25, %c0_26], %62 {strides = array<i32>} : memref<1x2x32xf32, #tpu.memory_space<vmem>>, vector<1x2x32xf32>,
    return
  }
  func.func @transform_0(%arg0: i32) -> (i32, i32, i32) {
    %c0_i32 = arith.constant 0 : i32
    %c0_i32_0 = arith.constant 0 : i32
    %c0_i32_1 = arith.constant 0 : i32
    return %arg0, %c0_i32, %c0_i32_0 : i32, i32, i32
  }
  func.func @transform_1(%arg0: i32) -> (i32, i32, i32) {
    %c0_i32 = arith.constant 0 : i32
    %c0_i32_0 = arith.constant 0 : i32
    %c0_i32_1 = arith.constant 0 : i32
    %c0_i32_2 = arith.constant 0 : i32
    return %c0_i32, %c0_i32_0, %c0_i32_1 : i32, i32, i32
  }
  func.func @transform_2(%arg0: i32) -> (i32, i32) {
    %c0_i32 = arith.constant 0 : i32
    %c0_i32_0 = arith.constant 0 : i32
    %c0_i32_1 = arith.constant 0 : i32
    return %c0_i32, %c0_i32_0 : i32, i32
  }
  func.func @transform_3(%arg0: i32) -> (i32, i32) {
    %c0_i32 = arith.constant 0 : i32
    %c0_i32_0 = arith.constant 0 : i32
    %c0_i32_1 = arith.constant 0 : i32
    return %c0_i32, %c0_i32_0 : i32, i32
  }
  func.func @transform_4(%arg0: i32) -> (i32, i32) {
    %c0_i32 = arith.constant 0 : i32
    %c0_i32_0 = arith.constant 0 : i32
    %c0_i32_1 = arith.constant 0 : i32
    return %c0_i32, %c0_i32_0 : i32, i32
  }
  func.func @transform_5(%arg0: i32) -> (i32, i32) {
    %c0_i32 = arith.constant 0 : i32
    %c0_i32_0 = arith.constant 0 : i32
    %c0_i32_1 = arith.constant 0 : i32
    return %c0_i32, %c0_i32_0 : i32, i32
  }
  func.func @transform_6(%arg0: i32) -> (i32, i32) {
    %c0_i32 = arith.constant 0 : i32
    %c0_i32_0 = arith.constant 0 : i32
    %c0_i32_1 = arith.constant 0 : i32
    return %c0_i32, %c0_i32_0 : i32, i32
  }
  func.func @transform_7(%arg0: i32) -> (i32, i32) {
    %c0_i32 = arith.constant 0 : i32
    %c0_i32_0 = arith.constant 0 : i32
    %c0_i32_1 = arith.constant 0 : i32
    return %c0_i32, %c0_i32_0 : i32, i32
  }
  func.func @transform_8(%arg0: i32) -> (i32, i32, i32) {
    %c0_i32 = arith.constant 0 : i32
    %c0_i32_0 = arith.constant 0 : i32
    %c0_i32_1 = arith.constant 0 : i32
    return %arg0, %c0_i32, %c0_i32_0 : i32, i32, i32
  }
}

</mosaic_0001>

<bundles_post_ra>
// kernel: seq2seq_attention_forward.6
= control target key start
LH: loop header
LB: loop body
LE: loop exit
PB: predicated region body
PF: predicated region fallthrough
CT: control target
= control target key end

     0   :  { %vm25_vm0 = vcmask 130048   ;;  %vm107_vm1 = vcmask 785408   ;;  %s173_s1 = inlined_call_operand.vmem [shape: f32[16,96], index: 1, kind: input, shape index: {}]   ;;  %s174_s0 = inlined_call_operand.vmem [shape: f32[16,16], index: 0, kind: input, shape index: {}]   ;;  %s175_s2 = inlined_call_operand.vmem [shape: f32[1,96], index: 2, kind: input, shape index: {}]   ;;  %s176_s3 = inlined_call_operand.vmem [shape: f32[16,96], index: 3, kind: output, shape index: {}]  }
   0x1   :  { %v16_v0 = vld [vmem:[%s173_s1] sm:$0xff]  ;;  %v17_v1 = vld [vmem:[%s173_s1 + $0x8] sm:$0xff] }
   0x2   :  { %v14_v2 = vld [vmem:[%s174_s0] sm:$0xff]  ;;  %v128_v3 = vpack.c.bf16 %v17_v1, %v16_v0  ;;  %v15_v4 = vld [vmem:[%s174_s0 + $0x8] sm:$0xff] }
   0x3   :  { %125 = vmatprep.mubr.msk.f32.mxu0 %vm25_vm0, %v14_v2  ;;  %v114_v5 = vld [vmem:[%s175_s2] ss:$0 sm:$0xff] }
   0x4   :  { %129 = vmatprep.subr.bf16.mxu0 %v128_v3 }
   0x5   :  { %131 = vmatpush3.bf16.msra.mxu0 %v128_v3 }
   0x8   :  { %126 = vmatmul.mubr.msk.f32.vlgmr.msra.gmra.mrb[0].mxu0 %vm25_vm0, %v15_v4 }
  0xdb   :  { %v127_v6 = vpop.f32.mrb[0].mxu0 }
  0xdc   :  { %v104_v7 = vadd.f32 %v127_v6, %v114_v5  ;;  %v98_v8 = vpop.f32.mrb[1].mxu0 }
  0xdd   :  { %v99_v9 = vadd.f32 %v114_v5, %v98_v8 }
  0xde   :  { %109 = vst.msk [vmem:[%s176_s3 + $0x8] sm:$0xff] %vm107_vm1, %v104_v7 }
  0xdf   :  { %108 = vst.msk [vmem:[%s176_s3] sm:$0xff] %vm107_vm1, %v99_v9 }

// kernel: seq2seq_attention_forward.9
= control target key start
LH: loop header
LB: loop body
LE: loop exit
PB: predicated region body
PF: predicated region fallthrough
CT: control target
= control target key end

     0   :  { %vm25_vm0 = vcmask 130048   ;;  %vm109_vm1 = vcmask 779264   ;;  %vm107_vm2 = vcmask 785408   ;;  %s174_s1 = inlined_call_operand.vmem [shape: f32[16,96], index: 1, kind: input, shape index: {}]   ;;  %s175_s0 = inlined_call_operand.vmem [shape: f32[10,16], index: 0, kind: input, shape index: {}]   ;;  %s176_s2 = inlined_call_operand.vmem [shape: f32[1,96], index: 2, kind: input, shape index: {}]   ;;  %s177_s3 = inlined_call_operand.vmem [shape: f32[10,96], index: 3, kind: output, shape index: {}]  }
   0x1   :  { %v16_v0 = vld [vmem:[%s174_s1] sm:$0xff]  ;;  %v17_v1 = vld [vmem:[%s174_s1 + $0x8] sm:$0xff] }
   0x2   :  { %v14_v2 = vld [vmem:[%s175_s0] sm:$0xff]  ;;  %v129_v3 = vpack.c.bf16 %v17_v1, %v16_v0  ;;  %v15_v4 = vld [vmem:[%s175_s0 + $0x8] sm:$0x3] }
   0x3   :  { %126 = vmatprep.mubr.msk.f32.mxu0 %vm25_vm0, %v14_v2  ;;  %v115_v5 = vld [vmem:[%s176_s2] ss:$0 sm:$0xff] }
   0x4   :  { %130 = vmatprep.subr.bf16.mxu0 %v129_v3 }
   0x5   :  { %132 = vmatpush3.bf16.msra.mxu0 %v129_v3 }
   0x8   :  { %127 = vmatmul.mubr.msk.f32.vlgmr.msra.gmra.mrb[0].mxu0 %vm25_vm0, %v15_v4 }
  0xdb   :  { %v128_v6 = vpop.f32.mrb[0].mxu0 }
  0xdc   :  { %v104_v7 = vadd.f32 %v128_v6, %v115_v5  ;;  %v98_v8 = vpop.f32.mrb[1].mxu0 }
  0xdd   :  { %v99_v9 = vadd.f32 %v115_v5, %v98_v8 }
  0xde   :  { %110 = vst.msk [vmem:[%s177_s3 + $0x8] sm:$0x3] %vm109_vm1, %v104_v7 }
  0xdf   :  { %108 = vst.msk [vmem:[%s177_s3] sm:$0xff] %vm107_vm2, %v99_v9 }

// kernel: seq2seq_attention_forward.8
= control target key start
LH: loop header
LB: loop body
LE: loop exit
PB: predicated region body
PF: predicated region fallthrough
CT: control target
= control target key end

     0   :  { %vm31_vm0 = vcmask 523264   ;;  %vm127_vm1 = vcmask 261120   ;;  %s253_s1 = inlined_call_operand.vmem [shape: f32[64,32], index: 1, kind: input, shape index: {}]   ;;  %s254_s0 = inlined_call_operand.vmem [shape: f32[16,64], index: 0, kind: input, shape index: {}]   ;;  %s255_s2 = inlined_call_operand.vmem [shape: f32[1,32], index: 2, kind: input, shape index: {}]   ;;  %s256_s3 = inlined_call_operand.vmem [shape: f32[16,32], index: 3, kind: output, shape index: {}]  }
   0x1   :  { %v16_v0 = vld [vmem:[%s253_s1] sm:$0xff]  ;;  %v17_v1 = vld [vmem:[%s253_s1 + $0x8] sm:$0xff]  ;;  %v18_v2 = vld [vmem:[%s253_s1 + $0x10] sm:$0xff] }
   0x2   :  { %v168_v3 = vpack.c.bf16 %v17_v1, %v16_v0  ;;  %v19_v4 = vld [vmem:[%s253_s1 + $0x18] sm:$0xff]  ;;  %v20_v6 = vld [vmem:[%s253_s1 + $0x20] sm:$0xff]  ;;  %v21_v7 = vld [vmem:[%s253_s1 + $0x28] sm:$0xff] }
   0x3   :  { %v172_v5 = vpack.c.bf16 %v19_v4, %v18_v2  ;;  %v14_v8 = vld [vmem:[%s254_s0] sm:$0xff]  ;;  %v176_v9 = vpack.c.bf16 %v21_v7, %v20_v6  ;;  %v22_v10 = vld [vmem:[%s253_s1 + $0x30] sm:$0xff]  ;;  %v23_v11 = vld [vmem:[%s253_s1 + $0x38] sm:$0xff] }
   0x4   :  { %169 = vmatprep.subr.bf16.mxu0 %v168_v3  ;;  %165 = vmatprep.mubr.msk.f32.mxu0 %vm31_vm0, %v14_v8  ;;  %v180_v12 = vpack.c.bf16 %v23_v11, %v22_v10  ;;  %v15_v13 = vld [vmem:[%s254_s0 + $0x8] sm:$0xff]  ;;  %v134_v14 = vld [vmem:[%s255_s2] ss:$0 sm:$0xff] }
   0x5   :  { %171 = vmatpush3.bf16.msra.mxu0 %v168_v3 }
   0x6   :  { %173 = vmatprep.subr.bf16.mxu0 %v172_v5 }
   0x9   :  { %175 = vmatpush3.bf16.msra.mxu0 %v172_v5 }
   0xa   :  { %177 = vmatprep.subr.bf16.mxu0 %v176_v9 }
   0xd   :  { %179 = vmatpush3.bf16.msra.mxu0 %v176_v9 }
   0xe   :  { %181 = vmatprep.subr.bf16.mxu0 %v180_v12 }
  0x11   :  { %183 = vmatpush3.bf16.msra.mxu0 %v180_v12 }
  0x14   :  { %166 = vmatmul.mubr.msk.f32.vlgmr.msra.gmra.mrb[0].mxu0 %vm31_vm0, %v15_v13 }
  0xe7   :  { %v167_v15 = vpop.f32.mrb[0].mxu0 }
  0xe8   :  { %v110_v16 = vadd.f32 %v167_v15, %v134_v14  ;;  %v104_v17 = vpop.f32.mrb[1].mxu0 }
  0xe9   :  { %v105_v18 = vadd.f32 %v134_v14, %v104_v17 }
  0xea   :  { %v138_v19 = vmul.f32 -1.442695, %v110_v16 }
  0xeb   :  { %v137_v20 = vmul.f32 -1.442695, %v105_v18 }
  0xec   :  { %184 = vpow2.f32 %v138_v19 }
  0xed   :  { %186 = vpow2.f32 %v137_v20 }
  0xf6   :  { %v185_v21 = vpop.eup %184 }
  0xf7   :  { %v187_v22 = vpop.eup %186  ;;  %v120_v23 = vadd.f32 1.0, %v185_v21 }
  0xf8   :  { %v119_v24 = vadd.f32 1.0, %v187_v22 }
  0xf9   :  { %188 = vrcp.f32 %v120_v23 }
  0xfa   :  { %190 = vrcp.f32 %v119_v24 }
 0x103   :  { %v189_v25 = vpop.eup %188 }
 0x104   :  { %v191_v26 = vpop.eup %190  ;;  %v126_v27 = vmul.f32 %v189_v25, %v15_v13 }
 0x105   :  { %v125_v28 = vmul.f32 %v191_v26, %v14_v8 }
 0x106   :  { %129 = vst.msk [vmem:[%s256_s3 + $0x8] sm:$0xff] %vm127_vm1, %v126_v27 }
 0x107   :  { %128 = vst.msk [vmem:[%s256_s3] sm:$0xff] %vm127_vm1, %v125_v28 }

// kernel: seq2seq_attention_forward.7
= control target key start
LH: loop header
LB: loop body
LE: loop exit
PB: predicated region body
PF: predicated region fallthrough
CT: control target
= control target key end

     0   :  { %s788_s24 = smov 0   ;;  %s841_s0 = inlined_call_operand.vmem [shape: f32[8,2,48], index: 0, kind: input, shape index: {}]   ;;  %s842_s1 = inlined_call_operand.vmem [shape: f32[8,2,48], index: 1, kind: input, shape index: {}]   ;;  %s843_s2 = inlined_call_operand.vmem [shape: f32[16,48], index: 2, kind: input, shape index: {}]   ;;  %s844_s3 = inlined_call_operand.vmem [shape: f32[16,48], index: 3, kind: input, shape index: {}]   ;;  %s845_s4 = inlined_call_operand.vmem [shape: f32[1,48], index: 4, kind: input, shape index: {}]   ;;  %s846_s5 = inlined_call_operand.vmem [shape: f32[1,48], index: 5, kind: input, shape index: {}]   ;;  %s847_s6 = inlined_call_operand.vmem [shape: f32[8,2,16], index: 6, kind: output, shape index: {0}]   ;;  %s848_s7 = inlined_call_operand.vmem [shape: f32[8,2,16], index: 7, kind: output, shape index: {1}]  }
   0x1 LB: > { %s660_s25 = sadd.s32 4294967295, %s738_s24   ;;  %p664_p0 = scmp.ge.s32.totalorder %s738_s24, 1  ;;  %s738_s24 = sphi %s788_s24, %s18_s24  }
   0x2   : > { %p254_p1 = scmp.lt.s32.totalorder %s738_s24, 9 }
   0x4   : > { %p255_p2 = pnand %p664_p0, %p254_p1 }
   0x5   : > { %p294_p3 = scmp.lt.s32.totalorder (!%p255_p2), %s660_s25, 7  ;;  %s298_s26 = ssub.s32 (!%p255_p2), 7, %s660_s25 }
   0x6   : > { %258 = sbr.rel (%p255_p2) target bundleno = 725 (0x2d5), region = 44  ;;  %p299_p4 = scmp.lt.s32.totalorder (!%p255_p2), %s298_s26, 7 }
   0x7   : > { %p669_p5 = scmp.ne.s32.totalorder (!%p255_p2), %s660_s25, 0 }
   0xd   : > { %s295_s27 = scalar_select %p294_p3, %s660_s25, 7 }
   0xe   : > { %s850_s26 = smov (!%p299_p4, %s298_s26), 7  ;;  %317 = sbr.rel (%p669_p5) target bundleno = 21 (0x15), region = 48 }
   0xf   : > { %s665_s28 = sshll.u32 %s295_s27, 1  ;;  %s666_s9 = sshll.u32 %s850_s26, 1  ;;  %vm318_vm0 = vcmask (!%p669_p5), 123904   ;;  %v740_v0 = vmov (!%p669_p5), 0.0  }
  0x10   : > { %s799_s8 = scalar_lea.vmem %s841_s0, %s665_s28  ;;  %s804_s12 = scalar_lea.vmem %s842_s1, %s666_s9  ;;  %319 = vst.msk [vmem:[#allocation2] sm:$0x3] (!%p669_p5), %vm318_vm0, %v740_v0  ;;  %320 = vst.msk [vmem:[#allocation3] sm:$0x3] (!%p669_p5), %vm318_vm0, %v740_v0 }
  0x11   : > { %s809_s15 = scalar_lea.vmem %s847_s6, %s665_s28  ;;  %s814_s18 = scalar_lea.vmem %s848_s7, %s666_s9 }
  0x15 PF: > { %v323_v1 = vld [vmem:[%s843_s2] sm:$0xff]  ;;  %v324_v2 = vld [vmem:[%s843_s2 + $0x8] sm:$0xff]  ;;  %v741_v3 = vmov 0.0|0.0   ;;  %vm742_vm1 = vmmov 0   ;;  %v743_v5 = vmov 0.0   ;;  %vm332_vm2 = vcmask 130048  }
  0x16   : > { %698 = vmatprep.subr.bf16.mxu0 %v741_v3  ;;  %v699_v4 = vpack.c.bf16 %v324_v2, %v323_v1  ;;  %688 = vmatprep.mubr.msk.f32.mxu0 %vm742_vm1, %v743_v5  ;;  %v437_v6 = vld [vmem:[%s844_s3] sm:$0xff]  ;;  %v438_v7 = vld [vmem:[%s844_s3 + $0x8] sm:$0xff]  ;;  %s744_s10 = smov 96   ;;  %s745_s11 = smov 32   ;;  %vm552_vm3 = vcmask 123904  }
  0x17   : > { %701 = vmatprep.subr.bf16.mxu1 %v741_v3  ;;  %v702_v8 = vpack.c.bf16 %v438_v7, %v437_v6  ;;  %695 = vmatprep.mubr.msk.f32.mxu1 %vm742_vm1, %v743_v5  ;;  %v322_v9 = vld [vmem:[#allocation2] sm:$0x3]  ;;  %v436_v10 = vld [vmem:[#allocation3] sm:$0x3] }
  0x18   : > { %700 = vmatpush3.bf16.msra.mxu0 %v699_v4  ;;  %v670_v11 = vld [vmem:[%s845_s4] ss:$0 sm:$0xff] }
  0x19   : > { %703 = vmatpush3.bf16.msra.mxu1 %v702_v8  ;;  %v673_v13 = vld [vmem:[%s846_s5] ss:$0 sm:$0xff] }
  0x1a   : > { %v321_v19 = vld [vmem:[%s799_s8] sm:$0x3]  ;;  %s746_s8 = smov 16  }
  0x1b   : > { %689 = vmatmul.mubr.msk.f32.vlgmr.msra.gmra.mrb[0].mxu0 %vm332_vm2, %v322_v9  ;;  %v435_v21 = vld [vmem:[%s804_s12] sm:$0x3]  ;;  %s747_s12 = smov 112  }
  0x1c   : > { %696 = vmatmul.mubr.msk.f32.vlgmr.msra.gmra.mrb[0].mxu1 %vm332_vm2, %v436_v10 }
  0xee   : > { %v402_v12 = vpop.f32.mrb[0].mxu0 }
  0xef   : > { %v403_v14 = vadd.f32 %v670_v11, %v402_v12  ;;  %v690_v15 = vpop.f32.mrb[1].mxu0  ;;  %v515_v16 = vpop.f32.mrb[0].mxu1 }
  0xf0   : > { %v697_v17 = vpop.f32.mrb[1].mxu1  ;;  %v516_v18 = vadd.f32 %v673_v13, %v515_v16 }
  0xf1   : > { %414 = vrot.lane.b32.xlu0 %v403_v14, %s744_s10  ;;  %v406_v20 = vadd.f32 %v403_v14, %v321_v19 }
  0xf2   : > { %v519_v23 = vadd.f32 %v516_v18, %v435_v21 }
  0xf3   : > { %v672_v22 = vmul.f32 -1.442695, %v406_v20 }
  0xf4   : > { %v675_v24 = vmul.f32 -1.442695, %v519_v23 }
  0xf5   : > { %527 = vrot.lane.b32.xlu0 %v516_v18, %s744_s10  ;;  %720 = vpow2.f32 %v672_v22 }
  0xf6   : > { %722 = vpow2.f32 %v675_v24 }
  0xff   : > { %v721_v25 = vpop.eup %720 }
 0x100   : > { %v410_v26 = vadd.f32 1.0, %v721_v25  ;;  %v723_v27 = vpop.eup %722 }
 0x101   : > { %v523_v28 = vadd.f32 1.0, %v723_v27 }
 0x102   : > { %724 = vrcp.f32 %v410_v26 }
 0x103   : > { %726 = vrcp.f32 %v523_v28 }
 0x10c   : > { %v725_v29 = vpop.eup %724 }
 0x10d   : > { %v727_v32 = vpop.eup %726  ;;  %v424_v42 = vsub.f32 1.0, %v725_v29 }
 0x10e   : > { %v537_v48 = vsub.f32 1.0, %v727_v32 }
 0x163   : > { %v415_v30 = vpop.permute.xlu0 %414 }
 0x164   : > { %v417_v31 = vmul.f32 %v725_v29, %v415_v30 }
 0x166   : > { %419 = vrot.lane.b32.xlu1 %v417_v31, %s745_s11 }
 0x167   : > { %v528_v33 = vpop.permute.xlu0 %527 }
 0x168   : > { %v530_v34 = vmul.f32 %v727_v32, %v528_v33 }
 0x16a   : > { %532 = vrot.lane.b32.xlu1 %v530_v34, %s745_s11 }
 0x16e   : > { %430 = vrot.lane.b32.xlu1 %v322_v9, %s746_s8 }
 0x172   : > { %543 = vrot.lane.b32.xlu1 %v436_v10, %s746_s8 }
 0x1d8   : > { %v420_v35 = vpop.permute.xlu1 %419 }
 0x1d9   : > { %v422_v36 = vadd.f32 %v420_v35, %v321_v19 }
 0x1db   : > { %728 = vtanh.f32 %v422_v36 }
 0x1dc   : > { %v533_v37 = vpop.permute.xlu1 %532 }
 0x1dd   : > { %v535_v38 = vadd.f32 %v533_v37, %v435_v21 }
 0x1df   : > { %730 = vtanh.f32 %v535_v38 }
 0x1e0   : > { %v431_v41 = vpop.permute.xlu1 %430 }
 0x1e1   : > { %v433_v44 = vmul.f32 %v725_v29, %v431_v41 }
 0x1e4   : > { %v544_v46 = vpop.permute.xlu1 %543 }
 0x1e5   : > { %v729_v39 = vpop.eup %728  ;;  %v546_v50 = vmul.f32 %v727_v32, %v544_v46 }
 0x1e6   : > { %426 = vrot.lane.b32.xlu0 %v729_v39, %s747_s12 }
 0x1e9   : > { %v731_v40 = vpop.eup %730 }
 0x1ea   : > { %539 = vrot.lane.b32.xlu0 %v731_v40, %s747_s12 }
 0x258   : > { %v427_v43 = vpop.permute.xlu0 %426 }
 0x259   : > { %v429_v45 = vmul.f32 %v427_v43, %v424_v42 }
 0x25b   : > { %v434_v47 = vadd.f32 %v433_v44, %v429_v45 }
 0x25c   : > { %v540_v49 = vpop.permute.xlu0 %539 }
 0x25d   : > { %v542_v51 = vmul.f32 %v540_v49, %v537_v48  ;;  %549 = vrot.lane.b32.xlu0 %v434_v47, %s747_s12 }
 0x25f   : > { %v547_v52 = vadd.f32 %v546_v50, %v542_v51 }
 0x261   : > { %555 = vrot.lane.b32.xlu1 %v547_v52, %s747_s12 }
 0x2cf   : > { %v550_v53 = vpop.permute.xlu0 %549 }
 0x2d0   : > { %553 = vst.msk [vmem:[#allocation2] sm:$0x3] %vm552_vm3, %v550_v53  ;;  %559 = vst.msk [vmem:[%s809_s15] sm:$0x3] %vm552_vm3, %v550_v53 }
 0x2d3   : > { %v556_v54 = vpop.permute.xlu1 %555 }
 0x2d4   : > { %558 = vst.msk [vmem:[#allocation3] sm:$0x3] %vm552_vm3, %v556_v54  ;;  %560 = vst.msk [vmem:[%s814_s18] sm:$0x3] %vm552_vm3, %v556_v54 }
 0x2d5 PF: > { %s18_s24 = sadd.s32 1, %s738_s24  }
 0x2d6   : > { %p15_p6 = scmp.ge.s32.totalorder %s18_s24, 10  }
 0x2d8   :  { %17 = sbr.rel (!%p15_p6) target bundleno = 1 (0x1), region = 93 }

// kernel: seq2seq_attention_forward.11
= control target key start
LH: loop header
LB: loop body
LE: loop exit
PB: predicated region body
PF: predicated region fallthrough
CT: control target
= control target key end

     0   :  { %vm27_vm0 = vcmask 261120   ;;  %vm111_vm1 = vcmask 402432   ;;  %vm109_vm2 = vcmask 408576   ;;  %s192_s1 = inlined_call_operand.vmem [shape: f32[32,50], index: 1, kind: input, shape index: {}]   ;;  %s193_s0 = inlined_call_operand.vmem [shape: f32[10,32], index: 0, kind: input, shape index: {}]   ;;  %s194_s2 = inlined_call_operand.vmem [shape: f32[1,50], index: 2, kind: input, shape index: {}]   ;;  %s195_s3 = inlined_call_operand.vmem [shape: f32[10,50], index: 3, kind: output, shape index: {}]  }
   0x1   :  { %v16_v0 = vld [vmem:[%s192_s1] sm:$0xff]  ;;  %v17_v1 = vld [vmem:[%s192_s1 + $0x8] sm:$0xff]  ;;  %v18_v2 = vld [vmem:[%s192_s1 + $0x10] sm:$0xff] }
   0x2   :  { %v137_v3 = vpack.c.bf16 %v17_v1, %v16_v0  ;;  %v19_v4 = vld [vmem:[%s192_s1 + $0x18] sm:$0xff]  ;;  %v14_v5 = vld [vmem:[%s193_s0] sm:$0xff]  ;;  %v15_v7 = vld [vmem:[%s193_s0 + $0x8] sm:$0x3] }
   0x3   :  { %v141_v6 = vpack.c.bf16 %v19_v4, %v18_v2  ;;  %134 = vmatprep.mubr.msk.f32.mxu0 %vm27_vm0, %v14_v5  ;;  %v117_v8 = vld [vmem:[%s194_s2] ss:$0 sm:$0xff] }
   0x4   :  { %138 = vmatprep.subr.bf16.mxu0 %v137_v3 }
   0x5   :  { %140 = vmatpush3.bf16.msra.mxu0 %v137_v3 }
   0x6   :  { %142 = vmatprep.subr.bf16.mxu0 %v141_v6 }
   0x9   :  { %144 = vmatpush3.bf16.msra.mxu0 %v141_v6 }
   0xc   :  { %135 = vmatmul.mubr.msk.f32.vlgmr.msra.gmra.mrb[0].mxu0 %vm27_vm0, %v15_v7 }
  0xdf   :  { %v136_v9 = vpop.f32.mrb[0].mxu0 }
  0xe0   :  { %v106_v10 = vadd.f32 %v136_v9, %v117_v8  ;;  %v100_v11 = vpop.f32.mrb[1].mxu0 }
  0xe1   :  { %v101_v12 = vadd.f32 %v117_v8, %v100_v11 }
  0xe2   :  { %112 = vst.msk [vmem:[%s195_s3 + $0x8] sm:$0x3] %vm111_vm1, %v106_v10 }
  0xe3   :  { %110 = vst.msk [vmem:[%s195_s3] sm:$0xff] %vm109_vm2, %v101_v12 }

// kernel: seq2seq_attention_forward.10
= control target key start
LH: loop header
LB: loop body
LE: loop exit
PB: predicated region body
PF: predicated region fallthrough
CT: control target
= control target key end

     0   :  { %s959_s27 = smov 0   ;;  %s1065_s0 = inlined_call_operand.vmem [shape: f32[5,2,96], index: 0, kind: input, shape index: {}]   ;;  %s1066_s1 = inlined_call_operand.vmem [shape: f32[2,8,32], index: 1, kind: input, shape index: {}]   ;;  %s1067_s2 = inlined_call_operand.vmem [shape: f32[2,16], index: 2, kind: input, shape index: {}]   ;;  %s1068_s3 = inlined_call_operand.vmem [shape: f32[16,32], index: 3, kind: input, shape index: {}]   ;;  %s1069_s4 = inlined_call_operand.vmem [shape: f32[1,32], index: 4, kind: input, shape index: {}]   ;;  %s1070_s5 = inlined_call_operand.vmem [shape: f32[32,96], index: 5, kind: input, shape index: {}]   ;;  %s1071_s6 = inlined_call_operand.vmem [shape: f32[32,96], index: 6, kind: input, shape index: {}]   ;;  %s1072_s7 = inlined_call_operand.vmem [shape: f32[1,96], index: 7, kind: input, shape index: {}]   ;;  %s1073_s8 = inlined_call_operand.vmem [shape: f32[5,2,32], index: 8, kind: output, shape index: {}]  }
   0x1 LB: > { %s787_s28 = sadd.s32 4294967295, %s901_s27   ;;  %p791_p0 = scmp.ge.s32.totalorder %s901_s27, 1  ;;  %s901_s27 = sphi %s959_s27, %s18_s27  }
   0x2   : > { %p261_p1 = scmp.lt.s32.totalorder %s901_s27, 6 }
   0x4   : > { %p262_p2 = pnand %p791_p0, %p261_p1 }
   0x5   : > { %p293_p3 = scmp.lt.s32.totalorder (!%p262_p2), %s787_s28, 4  ;;  %p794_p4 = scmp.ne.s32.totalorder (!%p262_p2), %s787_s28, 0 }
   0x6   : > { %265 = sbr.rel (%p262_p2) target bundleno = 1620 (0x654), region = 52 }
   0xd   : > { %s294_s29 = scalar_select %p293_p3, %s787_s28, 4 }
   0xe   : > { %304 = sbr.rel (%p794_p4) target bundleno = 246 (0xf6), region = 56  ;;  %v306_v0 = vld [vmem:[%s1068_s3] sm:$0xff] (!%p794_p4)  ;;  %v307_v1 = vld [vmem:[%s1068_s3 + $0x8] sm:$0xff] (!%p794_p4)  ;;  %v903_v2 = vmov (!%p794_p4), 0.0|0.0   ;;  %vm904_vm0 = vmmov (!%p794_p4), 0   ;;  %v905_v4 = vmov (!%p794_p4), 0.0  }
   0xf   : > { %s792_s30 = sshll.u32 %s294_s29, 1  ;;  %845 = vmatprep.subr.bf16.mxu0 (!%p794_p4), %v903_v2  ;;  %v846_v3 = vpack.c.bf16 (!%p794_p4), %v307_v1, %v306_v0  ;;  %820 = vmatprep.mubr.msk.f32.mxu0 (!%p794_p4), %vm904_vm0, %v905_v4  ;;  %v305_v5 = vld [vmem:[%s1067_s2] sm:$0x3] (!%p794_p4)  ;;  %vm315_vm1 = vcmask (!%p794_p4), 130048   ;;  %vm390_vm2 = vcmask (!%p794_p4), 254976  }
  0x10   : > { %s970_s11 = scalar_lea.vmem %s1065_s0, %s792_s30  ;;  %s975_s14 = scalar_lea.vmem %s1073_s8, %s792_s30  ;;  %v795_v6 = vld [vmem:[%s1069_s4] ss:$0 sm:$0xff] (!%p794_p4) }
  0x11   : > { %847 = vmatpush3.bf16.msra.mxu0 (!%p794_p4), %v846_v3 }
  0x14   : > { %821 = vmatmul.mubr.msk.f32.vlgmr.msra.gmra.mrb[0].mxu0 (!%p794_p4), %vm315_vm1, %v305_v5 }
  0xe7   : > { %v385_v7 = vpop.f32.mrb[0].mxu0 }
  0xe8   : > { %v386_v8 = vadd.f32 %v795_v6, %v385_v7  ;;  %v822_v9 = vpop.f32.mrb[1].mxu0 }
  0xea   : > { %879 = vtanh.f32 %v386_v8 }
  0xf4   : > { %v880_v10 = vpop.eup %879 }
  0xf5   : > { %391 = vst.msk [vmem:[#allocation2] sm:$0x3] %vm390_vm2, %v880_v10 }
  0xf6 PF: > { %v399_v11 = vlaneseq  ;;  %v906_v12 = vmov 1966171168   ;;  %v1002_v24 = vld [vmem:[%s1066_s1] sm:$0xff]  ;;  %vm430_vm3 = vcmask 261120   ;;  %v1008_v27 = vld [vmem:[%s1066_s1 + $0x8] sm:$0xff]  ;;  %vm449_vm4 = vcmask 1041409  }
  0xf7   : > { %v397_v13 = vunpack.c.l.s4 %v906_v12  ;;  %vm452_vm5 = vcmask 58368   ;;  %v907_v39 = vmov 0   ;;  %v615_v56 = vld [vmem:[%s1071_s6] sm:$0xff]  ;;  %v616_v57 = vld [vmem:[%s1071_s6 + $0x8] sm:$0xff]  ;;  %v617_v58 = vld [vmem:[%s1071_s6 + $0x10] sm:$0xff]  ;;  %v908_v59 = vmov 0.0|0.0  }
  0xf8   : > { %v989_v14 = vshrl.u32 %v399_v11, 7  ;;  %v440_v15 = vand.u32 127, %v399_v11  ;;  %882 = vset.pattern.permute.xlu0 %v907_v39  ;;  %881 = vset.pattern.permute.xlu1 %v907_v39  ;;  %v855_v60 = vpack.c.bf16 %v616_v57, %v615_v56  ;;  %v618_v61 = vld [vmem:[%s1071_s6 + $0x18] sm:$0xff]  ;;  %vm909_vm6 = vmmov 0   ;;  %v535_v6 = vld [vmem:[%s1070_s5] sm:$0xff]  ;;  %v536_v7 = vld [vmem:[%s1070_s5 + $0x8] sm:$0xff] }
  0xf9   : > { %v398_v16 = vunpack.c.0.s8 %v397_v13  ;;  %854 = vmatprep.subr.bf16.mxu1 %v908_v59  ;;  %v910_v62 = vmov 0.0   ;;  %848 = vmatprep.subr.bf16.mxu0 %v908_v59  ;;  %v858_v63 = vpack.c.bf16 %v618_v61, %v617_v58  ;;  %v849_v8 = vpack.c.bf16 %v536_v7, %v535_v6  ;;  %v537_v9 = vld [vmem:[%s1070_s5 + $0x10] sm:$0xff]  ;;  %v538_v10 = vld [vmem:[%s1070_s5 + $0x18] sm:$0xff]  ;;  %v798_v12 = vld [vmem:[%s1072_s7] ss:$0 sm:$0xff]  ;;  %s911_s26 = smov 64  }
  0xfa   : > { %v443_v18 = vsub.s32 %v440_v15, %v989_v14  ;;  %v997_v21 = vsub.s32 0, %v989_v14  ;;  %v463_v40 = vsub.s32 1, %v989_v14  ;;  %842 = vmatprep.mubr.msk.f32.mxu1 %vm909_vm6, %v910_v62  ;;  %831 = vmatprep.mubr.msk.f32.mxu0 %vm909_vm6, %v910_v62  ;;  %v852_v11 = vpack.c.bf16 %v538_v10, %v537_v9  ;;  %s913_s28 = smov 32  }
  0xfb   : > { %v401_v19 = vsub.s32 %v398_v16, %v989_v14  ;;  %856 = vmatpush3.bf16.msra.mxu1 %v855_v60  ;;  %850 = vmatpush3.bf16.msra.mxu0 %v849_v8  ;;  %vm731_vm7 = vcmask 254976  }
  0xfc   : > { %v991_v17 = vld [vmem:[#allocation2] sm:$0x3]  ;;  %857 = vmatprep.subr.bf16.mxu1 %v908_v59  ;;  %851 = vmatprep.subr.bf16.mxu0 %v908_v59 }
  0xfd   : > { %v402_v20 = vrot.slane %v991_v17, %v401_v19 }
  0xff   : > { %v410_v22 = vrot.slane %v402_v20, %v401_v19  ;;  %v403_v23 = vcombine.high %v402_v20, %v402_v20  ;;  %859 = vmatpush3.bf16.msra.mxu1 %v858_v63  ;;  %853 = vmatpush3.bf16.msra.mxu0 %v852_v11 }
 0x101   : > { %v421_v25 = vrot.slane %v410_v22, %v997_v21  ;;  %v417_v26 = vrot.slane %v403_v23, %v401_v19 }
 0x102   : > { %843 = vmatmul.mubr.msk.f32.vlgmr.msra.gmra.mrb[0].mxu1 %vm430_vm3, %v991_v17 }
 0x103   : > { %v428_v28 = vmul.f32 %v421_v25, %v1002_v24  ;;  %v425_v29 = vrot.slane %v417_v26, %v997_v21 }
 0x105   : > { %v431_v30 = vsel %vm430_vm3, %v428_v28, 0.0  ;;  %v429_v31 = vmul.f32 %v425_v29, %v1008_v27 }
 0x106   : > { %432 = vadd.xlane.f32.xlu0 %v431_v30 }
 0x107   : > { %v434_v32 = vsel %vm430_vm3, %v429_v31, 0.0 }
 0x10a   : > { %435 = vadd.xlane.f32.xlu0 %v434_v32 }
 0x193   : > { %v433_v33 = vpop.xlane.xlu0 %432 }
 0x194   : > { %v444_v35 = vrot.slane %v433_v33, %v443_v18 }
 0x197   : > { %v436_v34 = vpop.xlane.xlu0 %435 }
 0x198   : > { %v448_v36 = vrot.slane %v436_v34, %v443_v18 }
 0x19a   : > { %v450_v37 = vsel %vm449_vm4, %v448_v36, %v444_v35 }
 0x19b   : > { %v453_v38 = vsel %vm452_vm5, %v450_v37, -inf  ;;  %v534_v37 = vld [vmem:[%s970_s11] sm:$0x3]  ;;  %s912_s11 = smov 96  }
 0x19c   : > { %454 = vmax.xlane.f32.xlu1 %v453_v38 }
 0x1d5   : > { %v694_v13 = vpop.f32.mrb[0].mxu1 }
 0x1d6   : > { %v695_v14 = vadd.f32 %v798_v12, %v694_v13  ;;  %v844_v15 = vpop.f32.mrb[1].mxu1 }
 0x229   : > { %v455_v41 = vpop.xlane.xlu1 %454 }
 0x22a   : > { %v460_v42 = vrot.slane %v455_v41, %v997_v21  ;;  %v464_v43 = vrot.slane %v455_v41, %v463_v40 }
 0x22c   : > { %v467_v44 = vsub.f32 %v433_v33, %v460_v42  ;;  %v468_v45 = vsub.f32 %v436_v34, %v464_v43 }
 0x22e   : > { %v469_v46 = vmul.f32 1.442695, %v467_v44  ;;  %v471_v47 = vmul.f32 1.442695, %v468_v45 }
 0x230   : > { %883 = vpow2.f32 %v469_v46 }
 0x231   : > { %885 = vpow2.f32 %v471_v47 }
 0x23a   : > { %v884_v48 = vpop.eup %883 }
 0x23b   : > { %v886_v49 = vpop.eup %885  ;;  %476 = vperm.xlu1 %881, %v884_v48  }
 0x23c   : > { %479 = vperm.xlu0 %882, %v886_v49  }
 0x2ba   : > { %v477_v50 = vpop.permute.xlu1 %476 }
 0x2bb   : > { %v480_v51 = vpop.permute.xlu0 %479  ;;  %v484_v52 = vrot.slane %v477_v50, %v443_v18 }
 0x2bc   : > { %v488_v53 = vrot.slane %v480_v51, %v443_v18 }
 0x2be   : > { %v489_v54 = vsel %vm449_vm4, %v488_v53, %v484_v52 }
 0x2bf   : > { %v491_v55 = vsel %vm452_vm5, %v489_v54, 0.0 }
 0x2c0   : > { %492 = vadd.xlane.f32.xlu1 %v491_v55 }
 0x2d1   : > { %706 = vrot.lane.b32.xlu1 %v695_v14, %s911_s26 }
 0x34d   : > { %v493_v0 = vpop.xlane.xlu1 %492 }
 0x34e   : > { %887 = vrcp.f32 %v493_v0 }
 0x351   : > { %v707_v44 = vpop.permute.xlu1 %706 }
 0x358   : > { %v888_v1 = vpop.eup %887 }
 0x359   : > { %v499_v2 = vrot.slane %v888_v1, %v997_v21  ;;  %v503_v4 = vrot.slane %v888_v1, %v463_v40 }
 0x35b   : > { %v506_v3 = vmul.f32 %v884_v48, %v499_v2  ;;  %v507_v5 = vmul.f32 %v886_v49, %v503_v4 }
 0x35d   : > { %510 = vperm.xlu0 %882, %v506_v3  }
 0x361   : > { %515 = vperm.xlu0 %882, %v507_v5  }
 0x3dc   : > { %v511_v16 = vpop.permute.xlu0 %510 }
 0x3dd   : > { %v518_v18 = vmul.f32 %v511_v16, %v1002_v24 }
 0x3df   : > { %v520_v19 = vsel %vm430_vm3, %v518_v18, 0.0 }
 0x3e0   : > { %v521_v20 = vrot.slane %v520_v19, 4  ;;  %v516_v21 = vpop.permute.xlu0 %515 }
 0x3e1   : > { %v519_v22 = vmul.f32 %v516_v21, %v1008_v27 }
 0x3e2   : > { %v522_v23 = vadd.f32 %v521_v20, %v520_v19 }
 0x3e3   : > { %v527_v25 = vsel %vm430_vm3, %v519_v22, 0.0 }
 0x3e4   : > { %v523_v26 = vrot.slane %v522_v23, 2  ;;  %v528_v28 = vrot.slane %v527_v25, 4 }
 0x3e6   : > { %v524_v29 = vadd.f32 %v523_v26, %v522_v23  ;;  %v529_v30 = vadd.f32 %v528_v28, %v527_v25 }
 0x3e8   : > { %v530_v31 = vrot.slane %v529_v30, 2  ;;  %v525_v32 = vrot.slane %v524_v29, 1 }
 0x3ea   : > { %v531_v33 = vadd.f32 %v530_v31, %v529_v30  ;;  %v526_v35 = vadd.f32 %v525_v32, %v524_v29 }
 0x3ec   : > { %v532_v34 = vrot.slane %v531_v33, 1 }
 0x3ee   : > { %v533_v24 = vadd.f32 %v532_v34, %v531_v33 }
 0x3f0   : > { %v541_v36 = vsel %vm449_vm4, %v533_v24, %v526_v35 }
 0x3f1   : > { %832 = vmatmul.mubr.msk.f32.vlgmr.msra.gmra.mrb[0].mxu0 %vm430_vm3, %v541_v36 }
 0x4c4   : > { %v610_v38 = vpop.f32.mrb[0].mxu0 }
 0x4c5   : > { %v614_v27 = vadd.f32 %v610_v38, %v534_v37  ;;  %v833_v39 = vpop.f32.mrb[1].mxu0 }
 0x4c7   : > { %v698_v40 = vadd.f32 %v695_v14, %v614_v27 }
 0x4c9   : > { %v800_v41 = vmul.f32 -1.442695, %v698_v40 }
 0x4cb   : > { %889 = vpow2.f32 %v800_v41 }
 0x4d5   : > { %v890_v42 = vpop.eup %889 }
 0x4d6   : > { %v702_v43 = vadd.f32 1.0, %v890_v42 }
 0x4d8   : > { %891 = vrcp.f32 %v702_v43 }
 0x4e2   : > { %v892_v45 = vpop.eup %891 }
 0x4e3   : > { %v709_v46 = vmul.f32 %v892_v45, %v707_v44  ;;  %v716_v51 = vsub.f32 1.0, %v892_v45 }
 0x4e5   : > { %711 = vrot.lane.b32.xlu0 %v709_v46, %s911_s26 }
 0x557   : > { %v712_v47 = vpop.permute.xlu0 %711 }
 0x558   : > { %v714_v48 = vadd.f32 %v712_v47, %v614_v27 }
 0x55a   : > { %893 = vtanh.f32 %v714_v48 }
 0x564   : > { %v894_v49 = vpop.eup %893 }
 0x565   : > { %718 = vrot.lane.b32.xlu0 %v894_v49, %s912_s11 }
 0x569   : > { %722 = vrot.lane.b32.xlu0 %v991_v17, %s913_s28 }
 0x5d7   : > { %v719_v50 = vpop.permute.xlu0 %718 }
 0x5d8   : > { %v721_v53 = vmul.f32 %v719_v50, %v716_v51 }
 0x5db   : > { %v723_v52 = vpop.permute.xlu0 %722 }
 0x5dc   : > { %v725_v54 = vmul.f32 %v892_v45, %v723_v52 }
 0x5de   : > { %v726_v55 = vadd.f32 %v725_v54, %v721_v53 }
 0x5e0   : > { %728 = vrot.lane.b32.xlu0 %v726_v55, %s912_s11 }
 0x652   : > { %v729_v56 = vpop.permute.xlu0 %728 }
 0x653   : > { %732 = vst.msk [vmem:[#allocation2] sm:$0x3] %vm731_vm7, %v729_v56  ;;  %733 = vst.msk [vmem:[%s975_s14] sm:$0x3] %vm731_vm7, %v729_v56 }
 0x654 PF: > { %s18_s27 = sadd.s32 1, %s901_s27  }
 0x655   : > { %p15_p5 = scmp.ge.s32.totalorder %s18_s27, 7  }
 0x657   :  { %17 = sbr.rel (!%p15_p5) target bundleno = 1 (0x1), region = 86 }

</bundles_post_ra>
